<compile_context>
chip_gen: v7x
topology: tpu7x:2x2x1
jax: 0.10.0
libtpu: 0.0.40
codegen_flags: <defaults>
</compile_context>

<pallas_src>
import functools

import numpy as np

import jax
import jax.numpy as jnp
from jax.experimental import pallas as pl
from jax.experimental.pallas import tpu as pltpu


def spatial_attention_kernel(mask_ref, wcol_ref, x_ref, o_ref, pad_ref,
                             *, k, C, H, W, Bt, CS):
    """mask_ref: VMEM f32[k, E]       per-dx column-validity masks (constants).
    wcol_ref: VMEM f32[2*Bt, k*k]  per-tap weight columns (avg rows, max rows).
    x_ref   : VMEM (Bt, C, H*W)    Bt batch elements, native dtype, unpadded.
    o_ref   : VMEM (Bt, C, H*W)    gated output.
    pad_ref : VMEM f32(2*Bt, L)    scratch: zero-margined flat avg/max maps
                                   (rows [0:Bt) = avg, rows [Bt:2Bt) = max)."""
    p = k // 2
    HW = H * W
    E = HW + 2 * p * W                 # extended (row-padded) flat length
    PADF = p * W + p                   # logical left zero-pad of the flat map
    OFF = ((PADF + 127) // 128) * 128  # lane-aligned placement of the map
    L = OFF + HW + PADF                # scratch row length

    n_full = C // CS
    rem = C - n_full * CS

    # ---- zero only the pad margins (interior is fully overwritten below) ---
    zmargin = jnp.zeros((2 * Bt, PADF), jnp.float32)
    pad_ref[:, OFF - PADF:OFF] = zmargin
    pad_ref[:, OFF + HW:L] = zmargin

    # ---- fused single-pass channel mean / max per image --------------------
    for b in range(Bt):
        acc_s = jnp.zeros((CS, HW), jnp.float32)
        acc_m = jnp.full((CS, HW), -jnp.inf, jnp.float32)

        if n_full > 0:
            if n_full <= 8:                          # short: full static unroll
                for i in range(n_full):
                    slab = x_ref[b, i * CS:(i + 1) * CS, :].astype(jnp.float32)
                    acc_s = acc_s + slab
                    acc_m = jnp.maximum(acc_m, slab)
            else:
                def body(i, carry, b=b):
                    a_s, a_m = carry
                    c0 = pl.multiple_of(i * CS, CS)
                    slab = x_ref[b, pl.ds(c0, CS), :].astype(jnp.float32)
                    return a_s + slab, jnp.maximum(a_m, slab)
                acc_s, acc_m = jax.lax.fori_loop(0, n_full, body,
                                                 (acc_s, acc_m), unroll=4)

        if rem > 0:                                  # fold tail into partials
            tail = x_ref[b, n_full * CS:C, :].astype(jnp.float32)
            acc_s = acc_s.at[0:rem, :].add(tail)
            acc_m = acc_m.at[0:rem, :].max(tail)

        # One cross-sublane (XLU) reduce per image instead of one per slab.
        avg = jnp.sum(acc_s, axis=0, keepdims=True) * (1.0 / C)     # (1, HW)
        mxv = jnp.max(acc_m, axis=0, keepdims=True)                 # (1, HW)
        pad_ref[b:b + 1, OFF:OFF + HW] = avg
        pad_ref[Bt + b:Bt + b + 1, OFF:OFF + HW] = mxv

    # ---- joint (2*Bt)-row k x k conv on the tiny maps, flat layout ---------
    # Zero margins handle the H-direction overflow (== torch zero padding);
    # the compile-time per-dx masks kill the W-direction wrap-around.
    base = OFF - PADF
    att2 = jnp.zeros((2 * Bt, HW), jnp.float32)
    for dx in range(k):
        msk = mask_ref[dx:dx + 1, :]                          # (1, E)
        g = pad_ref[:, base + dx:base + dx + E] * msk         # (2Bt, E)
        for dy in range(k):
            t = dy * k + dx
            w_col = wcol_ref[:, t:t + 1]                      # (2Bt, 1)
            o = dy * W
            att2 = att2 + w_col * g[:, o:o + HW]

    gate = jax.nn.sigmoid(att2[:Bt, :] + att2[Bt:, :])        # (Bt, HW) f32
    gate = gate.astype(o_ref.dtype)                           # cast once

    # ---- gating: slab loop (bounded live vregs, ld/st overlap) -------------
    for b in range(Bt):
        g_row = gate[b:b + 1, :]                              # (1, HW)
        if n_full > 0:
            if n_full <= 8:
                for i in range(n_full):
                    c0 = i * CS
                    o_ref[b, c0:c0 + CS, :] = (
                        x_ref[b, c0:c0 + CS, :] * g_row).astype(o_ref.dtype)
            else:
                def gbody(i, carry, b=b, g_row=g_row):
                    c0 = pl.multiple_of(i * CS, CS)
                    o_ref[b, pl.ds(c0, CS), :] = (
                        x_ref[b, pl.ds(c0, CS), :] * g_row).astype(o_ref.dtype)
                    return carry
                jax.lax.fori_loop(0, n_full, gbody, 0, unroll=4)
        if rem > 0:
            c0 = n_full * CS
            o_ref[b, c0:C, :] = (x_ref[b, c0:C, :] * g_row).astype(o_ref.dtype)


def spatial_attention(x, conv_weight, kernel_size=5):
    """x: (B, C, H, W); conv_weight: (1, 2, k, k) (no bias)."""
    B, C, H, W = x.shape
    k = kernel_size
    assert k in (3, 5, 7), "kernel size must be 3 or 5 or 7"
    p = k // 2
    assert conv_weight.shape == (1, 2, k, k)

    HW = H * W
    E = HW + 2 * p * W
    PADF = p * W + p
    OFF = ((PADF + 127) // 128) * 128
    L = OFF + HW + PADF
    kk = k * k

    itemsize = jnp.dtype(x.dtype).itemsize
    CS = {4: 8, 2: 16, 1: 32}.get(itemsize, 8)    # full packed vreg tile
    CS = max(1, min(CS, C))

    # ---- batch blocking: big-enough blocks per grid step, capped for VMEM --
    per_img = C * HW * itemsize
    if B * per_img <= (4 << 20):
        Bt = B                                    # small problem: one step
    else:
        cap = max(1, (8 << 20) // per_img)        # keep 4x dbl-buffered modest
        Bt = 1
        for d in range(1, B + 1):
            if B % d == 0 and d <= cap:
                Bt = d
    grid = (B // Bt,)

    # Lane-dense view of the big tensor (free, contiguous reshape).
    x_flat = x.reshape(B, C, HW)

    # Compile-time column-validity masks: flat position j has column j % W;
    # tap dx is valid when 0 <= (j % W) + dx - p < W.
    jcol = np.arange(E) % W
    masks = np.stack(
        [((jcol >= (p - dx)) & (jcol < (W + p - dx))).astype(np.float32)
         for dx in range(k)], axis=0)                             # (k, E)
    masks = jnp.asarray(masks)

    # Per-tap weight columns: rows [0:Bt) get the avg-channel weight, rows
    # [Bt:2Bt) the max-channel weight (matching the scratch row layout).
    w2 = conv_weight.reshape(2, kk).astype(jnp.float32)
    wcols = jnp.concatenate([jnp.tile(w2[0:1], (Bt, 1)),
                             jnp.tile(w2[1:2], (Bt, 1))], axis=0)  # (2Bt, kk)

    block_bytes = Bt * per_img
    vmem_needed = (4 * block_bytes                 # double-buffered in + out
                   + 2 * Bt * L * 4                # pad scratch
                   + k * E * 4 + 2 * Bt * kk * 4)  # constants
    vmem_limit = int(min(max(2 * vmem_needed + (4 << 20), 32 << 20), 64 << 20))

    kernel = functools.partial(spatial_attention_kernel,
                               k=k, C=C, H=H, W=W, Bt=Bt, CS=CS)

    out_flat = pl.pallas_call(
        kernel,
        out_shape=jax.ShapeDtypeStruct((B, C, HW), x.dtype),
        grid=grid,
        in_specs=[
            # Constant per-dx masks, whole array each step.
            pl.BlockSpec((k, E), lambda i: (0, 0)),
            # Constant per-tap weight columns.
            pl.BlockSpec((2 * Bt, kk), lambda i: (0, 0)),
            # Bt unpadded batch elements per grid step, lane-dense.
            pl.BlockSpec((Bt, C, HW), lambda i: (i, 0, 0)),
        ],
        out_specs=pl.BlockSpec((Bt, C, HW), lambda i: (i, 0, 0)),
        scratch_shapes=[pltpu.VMEM((2 * Bt, L), jnp.float32)],
        compiler_params=pltpu.CompilerParams(
            dimension_semantics=("parallel",),
            vmem_limit_bytes=vmem_limit),
    )(masks, wcols, x_flat)

    return out_flat.reshape(B, C, H, W)


def spatial_attention_reference(x, conv_weight):
    """Pure-JAX reference mirroring the PyTorch forward."""
    avg = jnp.mean(x, axis=1, keepdims=True)
    mxv = jnp.max(x, axis=1, keepdims=True)
    att = jnp.concatenate([avg, mxv], axis=1)
    att = jax.lax.conv_general_dilated(
        att, conv_weight, window_strides=(1, 1), padding="SAME",
        dimension_numbers=("NCHW", "OIHW", "NCHW"))
    return jax.nn.sigmoid(att) * x


if __name__ == "__main__":
    key = jax.random.PRNGKey(0)

    def run_case(case_key, B, C, H, W, ksize):
        kx, kw = jax.random.split(case_key)
        x = jax.random.normal(kx, (B, C, H, W), dtype=jnp.float32)
        wgt = 0.1 * jax.random.normal(kw, (1, 2, ksize, ksize),
                                      dtype=jnp.float32)
        out = jax.block_until_ready(spatial_attention(x, wgt, kernel_size=ksize))
        ref = spatial_attention_reference(x, wgt)
        assert out.shape == (B, C, H, W)
        err = float(jnp.max(jnp.abs(out - ref)))
        assert jnp.allclose(out, ref, atol=1e-5, rtol=1e-5), err

    k0, k1, k2 = jax.random.split(key, 3)
    # Primary small shape from the module spec (k=5, single-slab reduction).
    run_case(k0, 2, 4, 16, 16, 5)
    # Static slab loop + rem-tail fold, kernel_size=3.
    run_case(k1, 2, 20, 16, 16, 3)
    # fori_loop(unroll=4) reduction + slab-loop gating path, kernel_size=7.
    run_case(k2, 2, 80, 16, 16, 7)

    print("KERNEL_OK")
</pallas_src>

<mosaic_0001>
module attributes {stable_mosaic.version = 11 : i64} {
  func.func @spatial_attention_kernel(%arg0: i32, %arg1: memref<5x320xf32, #tpu.memory_space<vmem>>, %arg2: memref<4x25xf32, #tpu.memory_space<vmem>>, %arg3: memref<2x4x256xf32, #tpu.memory_space<vmem>>, %arg4: memref<2x4x256xf32, #tpu.memory_space<vmem>>, %arg5: memref<4x418xf32, #tpu.memory_space<vmem>>) attributes {dimension_semantics = [#tpu.dimension_semantics<parallel>], iteration_bounds = array<i64: 1>, scalar_prefetch = 0 : i64, scratch_operands = 1 : i64, tpu.core_type = #tpu.core_type<tc>, window_params = [{pipeline_mode = #tpu.pipeline_mode<synchronous>, transform_indices = @transform_0, window_bounds = array<i64: 5, 320>}, {pipeline_mode = #tpu.pipeline_mode<synchronous>, transform_indices = @transform_1, window_bounds = array<i64: 4, 25>}, {transform_indices = @transform_2, window_bounds = array<i64: 2, 4, 256>}, {transform_indices = @transform_3, window_bounds = array<i64: 2, 4, 256>}]} {
    %cst = arith.constant 0.000000e+00 : f32
    %0 = vector.broadcast %cst : f32 to vector<4x34xf32>
    %c0 = arith.constant 0 : index
    %c94 = arith.constant 94 : index
    %1 = vector.load %arg5[%c0, %c94] : memref<4x418xf32, #tpu.memory_space<vmem>>, vector<4x34xf32>
    tpu.vector_store %arg5[%c0, %c94], %0 {strides = array<i32>} : memref<4x418xf32, #tpu.memory_space<vmem>>, vector<4x34xf32>,
    %c0_0 = arith.constant 0 : index
    %c384 = arith.constant 384 : index
    %2 = vector.load %arg5[%c0_0, %c384] : memref<4x418xf32, #tpu.memory_space<vmem>>, vector<4x34xf32>
    tpu.vector_store %arg5[%c0_0, %c384], %0 {strides = array<i32>} : memref<4x418xf32, #tpu.memory_space<vmem>>, vector<4x34xf32>,
    %cst_1 = arith.constant 0.000000e+00 : f32
    %3 = vector.broadcast %cst_1 : f32 to vector<4x256xf32>
    %cst_2 = arith.constant 0xFF800000 : f32
    %4 = vector.broadcast %cst_2 : f32 to vector<4x256xf32>
    %c0_3 = arith.constant 0 : index
    %c0_4 = arith.constant 0 : index
    %c0_5 = arith.constant 0 : index
    %5 = vector.load %arg3[%c0_3, %c0_4, %c0_5] : memref<2x4x256xf32, #tpu.memory_space<vmem>>, vector<1x4x256xf32>
    %6 = vector.shape_cast %5 : vector<1x4x256xf32> to vector<4x256xf32>
    %7 = arith.addf %3, %6 : vector<4x256xf32>
    %8 = arith.maximumf %4, %6 : vector<4x256xf32>
    %cst_6 = arith.constant dense<0.000000e+00> : vector<256xf32>
    %9 = vector.multi_reduction <add>, %7, %cst_6 [0] : vector<4x256xf32> to vector<256xf32>
    %10 = vector.shape_cast %9 : vector<256xf32> to vector<1x256xf32>
    %cst_7 = arith.constant 2.500000e-01 : f32
    %11 = vector.broadcast %cst_7 : f32 to vector<1x256xf32>
    %12 = arith.mulf %10, %11 : vector<1x256xf32>
    %cst_8 = arith.constant dense<0xFF800000> : vector<256xf32>
    %13 = vector.multi_reduction <maximumf>, %8, %cst_8 [0] : vector<4x256xf32> to vector<256xf32>
    %14 = vector.shape_cast %13 : vector<256xf32> to vector<1x256xf32>
    %c0_9 = arith.constant 0 : index
    %c128 = arith.constant 128 : index
    %15 = vector.load %arg5[%c0_9, %c128] : memref<4x418xf32, #tpu.memory_space<vmem>>, vector<1x256xf32>
    tpu.vector_store %arg5[%c0_9, %c128], %12 {strides = array<i32>} : memref<4x418xf32, #tpu.memory_space<vmem>>, vector<1x256xf32>,
    %c2 = arith.constant 2 : index
    %c128_10 = arith.constant 128 : index
    %16 = vector.load %arg5[%c2, %c128_10] : memref<4x418xf32, #tpu.memory_space<vmem>>, vector<1x256xf32>
    tpu.vector_store %arg5[%c2, %c128_10], %14 {strides = array<i32>} : memref<4x418xf32, #tpu.memory_space<vmem>>, vector<1x256xf32>,
    %cst_11 = arith.constant 0.000000e+00 : f32
    %17 = vector.broadcast %cst_11 : f32 to vector<4x256xf32>
    %cst_12 = arith.constant 0xFF800000 : f32
    %18 = vector.broadcast %cst_12 : f32 to vector<4x256xf32>
    %c1 = arith.constant 1 : index
    %c0_13 = arith.constant 0 : index
    %c0_14 = arith.constant 0 : index
    %19 = vector.load %arg3[%c1, %c0_13, %c0_14] : memref<2x4x256xf32, #tpu.memory_space<vmem>>, vector<1x4x256xf32>
    %20 = vector.shape_cast %19 : vector<1x4x256xf32> to vector<4x256xf32>
    %21 = arith.addf %17, %20 : vector<4x256xf32>
    %22 = arith.maximumf %18, %20 : vector<4x256xf32>
    %cst_15 = arith.constant dense<0.000000e+00> : vector<256xf32>
    %23 = vector.multi_reduction <add>, %21, %cst_15 [0] : vector<4x256xf32> to vector<256xf32>
    %24 = vector.shape_cast %23 : vector<256xf32> to vector<1x256xf32>
    %cst_16 = arith.constant 2.500000e-01 : f32
    %25 = vector.broadcast %cst_16 : f32 to vector<1x256xf32>
    %26 = arith.mulf %24, %25 : vector<1x256xf32>
    %cst_17 = arith.constant dense<0xFF800000> : vector<256xf32>
    %27 = vector.multi_reduction <maximumf>, %22, %cst_17 [0] : vector<4x256xf32> to vector<256xf32>
    %28 = vector.shape_cast %27 : vector<256xf32> to vector<1x256xf32>
    %c1_18 = arith.constant 1 : index
    %c128_19 = arith.constant 128 : index
    %29 = vector.load %arg5[%c1_18, %c128_19] : memref<4x418xf32, #tpu.memory_space<vmem>>, vector<1x256xf32>
    tpu.vector_store %arg5[%c1_18, %c128_19], %26 {strides = array<i32>} : memref<4x418xf32, #tpu.memory_space<vmem>>, vector<1x256xf32>,
    %c3 = arith.constant 3 : index
    %c128_20 = arith.constant 128 : index
    %30 = vector.load %arg5[%c3, %c128_20] : memref<4x418xf32, #tpu.memory_space<vmem>>, vector<1x256xf32>
    tpu.vector_store %arg5[%c3, %c128_20], %28 {strides = array<i32>} : memref<4x418xf32, #tpu.memory_space<vmem>>, vector<1x256xf32>,
    %cst_21 = arith.constant 0.000000e+00 : f32
    %31 = vector.broadcast %cst_21 : f32 to vector<4x256xf32>
    %c0_22 = arith.constant 0 : index
    %c0_23 = arith.constant 0 : index
    %32 = vector.load %arg1[%c0_22, %c0_23] : memref<5x320xf32, #tpu.memory_space<vmem>>, vector<1x320xf32>
    %c0_24 = arith.constant 0 : index
    %c94_25 = arith.constant 94 : index
    %33 = vector.load %arg5[%c0_24, %c94_25] : memref<4x418xf32, #tpu.memory_space<vmem>>, vector<4x320xf32>
    %34 = vector.broadcast %32 : vector<1x320xf32> to vector<4x320xf32>
    %35 = arith.mulf %33, %34 : vector<4x320xf32>
    %c0_26 = arith.constant 0 : index
    %c0_27 = arith.constant 0 : index
    %36 = vector.load %arg2[%c0_26, %c0_27] : memref<4x25xf32, #tpu.memory_space<vmem>>, vector<4x1xf32>
    %37 = vector.extract_strided_slice %35 {offsets = [0, 0], sizes = [4, 256], strides = [1, 1]} : vector<4x320xf32> to vector<4x256xf32>
    %38 = vector.broadcast %36 : vector<4x1xf32> to vector<4x256xf32>
    %39 = arith.mulf %38, %37 : vector<4x256xf32>
    %40 = arith.addf %31, %39 : vector<4x256xf32>
    %c0_28 = arith.constant 0 : index
    %c5 = arith.constant 5 : index
    %41 = vector.load %arg2[%c0_28, %c5] : memref<4x25xf32, #tpu.memory_space<vmem>>, vector<4x1xf32>
    %42 = vector.extract_strided_slice %35 {offsets = [0, 16], sizes = [4, 256], strides = [1, 1]} : vector<4x320xf32> to vector<4x256xf32>
    %43 = vector.broadcast %41 : vector<4x1xf32> to vector<4x256xf32>
    %44 = arith.mulf %43, %42 : vector<4x256xf32>
    %45 = arith.addf %40, %44 : vector<4x256xf32>
    %c0_29 = arith.constant 0 : index
    %c10 = arith.constant 10 : index
    %46 = vector.load %arg2[%c0_29, %c10] : memref<4x25xf32, #tpu.memory_space<vmem>>, vector<4x1xf32>
    %47 = vector.extract_strided_slice %35 {offsets = [0, 32], sizes = [4, 256], strides = [1, 1]} : vector<4x320xf32> to vector<4x256xf32>
    %48 = vector.broadcast %46 : vector<4x1xf32> to vector<4x256xf32>
    %49 = arith.mulf %48, %47 : vector<4x256xf32>
    %50 = arith.addf %45, %49 : vector<4x256xf32>
    %c0_30 = arith.constant 0 : index
    %c15 = arith.constant 15 : index
    %51 = vector.load %arg2[%c0_30, %c15] : memref<4x25xf32, #tpu.memory_space<vmem>>, vector<4x1xf32>
    %52 = vector.extract_strided_slice %35 {offsets = [0, 48], sizes = [4, 256], strides = [1, 1]} : vector<4x320xf32> to vector<4x256xf32>
    %53 = vector.broadcast %51 : vector<4x1xf32> to vector<4x256xf32>
    %54 = arith.mulf %53, %52 : vector<4x256xf32>
    %55 = arith.addf %50, %54 : vector<4x256xf32>
    %c0_31 = arith.constant 0 : index
    %c20 = arith.constant 20 : index
    %56 = vector.load %arg2[%c0_31, %c20] : memref<4x25xf32, #tpu.memory_space<vmem>>, vector<4x1xf32>
    %57 = vector.extract_strided_slice %35 {offsets = [0, 64], sizes = [4, 256], strides = [1, 1]} : vector<4x320xf32> to vector<4x256xf32>
    %58 = vector.broadcast %56 : vector<4x1xf32> to vector<4x256xf32>
    %59 = arith.mulf %58, %57 : vector<4x256xf32>
    %60 = arith.addf %55, %59 : vector<4x256xf32>
    %c1_32 = arith.constant 1 : index
    %c0_33 = arith.constant 0 : index
    %61 = vector.load %arg1[%c1_32, %c0_33] : memref<5x320xf32, #tpu.memory_space<vmem>>, vector<1x320xf32>
    %c0_34 = arith.constant 0 : index
    %c95 = arith.constant 95 : index
    %62 = vector.load %arg5[%c0_34, %c95] : memref<4x418xf32, #tpu.memory_space<vmem>>, vector<4x320xf32>
    %63 = vector.broadcast %61 : vector<1x320xf32> to vector<4x320xf32>
    %64 = arith.mulf %62, %63 : vector<4x320xf32>
    %c0_35 = arith.constant 0 : index
    %c1_36 = arith.constant 1 : index
    %65 = vector.load %arg2[%c0_35, %c1_36] : memref<4x25xf32, #tpu.memory_space<vmem>>, vector<4x1xf32>
    %66 = vector.extract_strided_slice %64 {offsets = [0, 0], sizes = [4, 256], strides = [1, 1]} : vector<4x320xf32> to vector<4x256xf32>
    %67 = vector.broadcast %65 : vector<4x1xf32> to vector<4x256xf32>
    %68 = arith.mulf %67, %66 : vector<4x256xf32>
    %69 = arith.addf %60, %68 : vector<4x256xf32>
    %c0_37 = arith.constant 0 : index
    %c6 = arith.constant 6 : index
    %70 = vector.load %arg2[%c0_37, %c6] : memref<4x25xf32, #tpu.memory_space<vmem>>, vector<4x1xf32>
    %71 = vector.extract_strided_slice %64 {offsets = [0, 16], sizes = [4, 256], strides = [1, 1]} : vector<4x320xf32> to vector<4x256xf32>
    %72 = vector.broadcast %70 : vector<4x1xf32> to vector<4x256xf32>
    %73 = arith.mulf %72, %71 : vector<4x256xf32>
    %74 = arith.addf %69, %73 : vector<4x256xf32>
    %c0_38 = arith.constant 0 : index
    %c11 = arith.constant 11 : index
    %75 = vector.load %arg2[%c0_38, %c11] : memref<4x25xf32, #tpu.memory_space<vmem>>, vector<4x1xf32>
    %76 = vector.extract_strided_slice %64 {offsets = [0, 32], sizes = [4, 256], strides = [1, 1]} : vector<4x320xf32> to vector<4x256xf32>
    %77 = vector.broadcast %75 : vector<4x1xf32> to vector<4x256xf32>
    %78 = arith.mulf %77, %76 : vector<4x256xf32>
    %79 = arith.addf %74, %78 : vector<4x256xf32>
    %c0_39 = arith.constant 0 : index
    %c16 = arith.constant 16 : index
    %80 = vector.load %arg2[%c0_39, %c16] : memref<4x25xf32, #tpu.memory_space<vmem>>, vector<4x1xf32>
    %81 = vector.extract_strided_slice %64 {offsets = [0, 48], sizes = [4, 256], strides = [1, 1]} : vector<4x320xf32> to vector<4x256xf32>
    %82 = vector.broadcast %80 : vector<4x1xf32> to vector<4x256xf32>
    %83 = arith.mulf %82, %81 : vector<4x256xf32>
    %84 = arith.addf %79, %83 : vector<4x256xf32>
    %c0_40 = arith.constant 0 : index
    %c21 = arith.constant 21 : index
    %85 = vector.load %arg2[%c0_40, %c21] : memref<4x25xf32, #tpu.memory_space<vmem>>, vector<4x1xf32>
    %86 = vector.extract_strided_slice %64 {offsets = [0, 64], sizes = [4, 256], strides = [1, 1]} : vector<4x320xf32> to vector<4x256xf32>
    %87 = vector.broadcast %85 : vector<4x1xf32> to vector<4x256xf32>
    %88 = arith.mulf %87, %86 : vector<4x256xf32>
    %89 = arith.addf %84, %88 : vector<4x256xf32>
    %c2_41 = arith.constant 2 : index
    %c0_42 = arith.constant 0 : index
    %90 = vector.load %arg1[%c2_41, %c0_42] : memref<5x320xf32, #tpu.memory_space<vmem>>, vector<1x320xf32>
    %c0_43 = arith.constant 0 : index
    %c96 = arith.constant 96 : index
    %91 = vector.load %arg5[%c0_43, %c96] : memref<4x418xf32, #tpu.memory_space<vmem>>, vector<4x320xf32>
    %92 = vector.broadcast %90 : vector<1x320xf32> to vector<4x320xf32>
    %93 = arith.mulf %91, %92 : vector<4x320xf32>
    %c0_44 = arith.constant 0 : index
    %c2_45 = arith.constant 2 : index
    %94 = vector.load %arg2[%c0_44, %c2_45] : memref<4x25xf32, #tpu.memory_space<vmem>>, vector<4x1xf32>
    %95 = vector.extract_strided_slice %93 {offsets = [0, 0], sizes = [4, 256], strides = [1, 1]} : vector<4x320xf32> to vector<4x256xf32>
    %96 = vector.broadcast %94 : vector<4x1xf32> to vector<4x256xf32>
    %97 = arith.mulf %96, %95 : vector<4x256xf32>
    %98 = arith.addf %89, %97 : vector<4x256xf32>
    %c0_46 = arith.constant 0 : index
    %c7 = arith.constant 7 : index
    %99 = vector.load %arg2[%c0_46, %c7] : memref<4x25xf32, #tpu.memory_space<vmem>>, vector<4x1xf32>
    %100 = vector.extract_strided_slice %93 {offsets = [0, 16], sizes = [4, 256], strides = [1, 1]} : vector<4x320xf32> to vector<4x256xf32>
    %101 = vector.broadcast %99 : vector<4x1xf32> to vector<4x256xf32>
    %102 = arith.mulf %101, %100 : vector<4x256xf32>
    %103 = arith.addf %98, %102 : vector<4x256xf32>
    %c0_47 = arith.constant 0 : index
    %c12 = arith.constant 12 : index
    %104 = vector.load %arg2[%c0_47, %c12] : memref<4x25xf32, #tpu.memory_space<vmem>>, vector<4x1xf32>
    %105 = vector.extract_strided_slice %93 {offsets = [0, 32], sizes = [4, 256], strides = [1, 1]} : vector<4x320xf32> to vector<4x256xf32>
    %106 = vector.broadcast %104 : vector<4x1xf32> to vector<4x256xf32>
    %107 = arith.mulf %106, %105 : vector<4x256xf32>
    %108 = arith.addf %103, %107 : vector<4x256xf32>
    %c0_48 = arith.constant 0 : index
    %c17 = arith.constant 17 : index
    %109 = vector.load %arg2[%c0_48, %c17] : memref<4x25xf32, #tpu.memory_space<vmem>>, vector<4x1xf32>
    %110 = vector.extract_strided_slice %93 {offsets = [0, 48], sizes = [4, 256], strides = [1, 1]} : vector<4x320xf32> to vector<4x256xf32>
    %111 = vector.broadcast %109 : vector<4x1xf32> to vector<4x256xf32>
    %112 = arith.mulf %111, %110 : vector<4x256xf32>
    %113 = arith.addf %108, %112 : vector<4x256xf32>
    %c0_49 = arith.constant 0 : index
    %c22 = arith.constant 22 : index
    %114 = vector.load %arg2[%c0_49, %c22] : memref<4x25xf32, #tpu.memory_space<vmem>>, vector<4x1xf32>
    %115 = vector.extract_strided_slice %93 {offsets = [0, 64], sizes = [4, 256], strides = [1, 1]} : vector<4x320xf32> to vector<4x256xf32>
    %116 = vector.broadcast %114 : vector<4x1xf32> to vector<4x256xf32>
    %117 = arith.mulf %116, %115 : vector<4x256xf32>
    %118 = arith.addf %113, %117 : vector<4x256xf32>
    %c3_50 = arith.constant 3 : index
    %c0_51 = arith.constant 0 : index
    %119 = vector.load %arg1[%c3_50, %c0_51] : memref<5x320xf32, #tpu.memory_space<vmem>>, vector<1x320xf32>
    %c0_52 = arith.constant 0 : index
    %c97 = arith.constant 97 : index
    %120 = vector.load %arg5[%c0_52, %c97] : memref<4x418xf32, #tpu.memory_space<vmem>>, vector<4x320xf32>
    %121 = vector.broadcast %119 : vector<1x320xf32> to vector<4x320xf32>
    %122 = arith.mulf %120, %121 : vector<4x320xf32>
    %c0_53 = arith.constant 0 : index
    %c3_54 = arith.constant 3 : index
    %123 = vector.load %arg2[%c0_53, %c3_54] : memref<4x25xf32, #tpu.memory_space<vmem>>, vector<4x1xf32>
    %124 = vector.extract_strided_slice %122 {offsets = [0, 0], sizes = [4, 256], strides = [1, 1]} : vector<4x320xf32> to vector<4x256xf32>
    %125 = vector.broadcast %123 : vector<4x1xf32> to vector<4x256xf32>
    %126 = arith.mulf %125, %124 : vector<4x256xf32>
    %127 = arith.addf %118, %126 : vector<4x256xf32>
    %c0_55 = arith.constant 0 : index
    %c8 = arith.constant 8 : index
    %128 = vector.load %arg2[%c0_55, %c8] : memref<4x25xf32, #tpu.memory_space<vmem>>, vector<4x1xf32>
    %129 = vector.extract_strided_slice %122 {offsets = [0, 16], sizes = [4, 256], strides = [1, 1]} : vector<4x320xf32> to vector<4x256xf32>
    %130 = vector.broadcast %128 : vector<4x1xf32> to vector<4x256xf32>
    %131 = arith.mulf %130, %129 : vector<4x256xf32>
    %132 = arith.addf %127, %131 : vector<4x256xf32>
    %c0_56 = arith.constant 0 : index
    %c13 = arith.constant 13 : index
    %133 = vector.load %arg2[%c0_56, %c13] : memref<4x25xf32, #tpu.memory_space<vmem>>, vector<4x1xf32>
    %134 = vector.extract_strided_slice %122 {offsets = [0, 32], sizes = [4, 256], strides = [1, 1]} : vector<4x320xf32> to vector<4x256xf32>
    %135 = vector.broadcast %133 : vector<4x1xf32> to vector<4x256xf32>
    %136 = arith.mulf %135, %134 : vector<4x256xf32>
    %137 = arith.addf %132, %136 : vector<4x256xf32>
    %c0_57 = arith.constant 0 : index
    %c18 = arith.constant 18 : index
    %138 = vector.load %arg2[%c0_57, %c18] : memref<4x25xf32, #tpu.memory_space<vmem>>, vector<4x1xf32>
    %139 = vector.extract_strided_slice %122 {offsets = [0, 48], sizes = [4, 256], strides = [1, 1]} : vector<4x320xf32> to vector<4x256xf32>
    %140 = vector.broadcast %138 : vector<4x1xf32> to vector<4x256xf32>
    %141 = arith.mulf %140, %139 : vector<4x256xf32>
    %142 = arith.addf %137, %141 : vector<4x256xf32>
    %c0_58 = arith.constant 0 : index
    %c23 = arith.constant 23 : index
    %143 = vector.load %arg2[%c0_58, %c23] : memref<4x25xf32, #tpu.memory_space<vmem>>, vector<4x1xf32>
    %144 = vector.extract_strided_slice %122 {offsets = [0, 64], sizes = [4, 256], strides = [1, 1]} : vector<4x320xf32> to vector<4x256xf32>
    %145 = vector.broadcast %143 : vector<4x1xf32> to vector<4x256xf32>
    %146 = arith.mulf %145, %144 : vector<4x256xf32>
    %147 = arith.addf %142, %146 : vector<4x256xf32>
    %c4 = arith.constant 4 : index
    %c0_59 = arith.constant 0 : index
    %148 = vector.load %arg1[%c4, %c0_59] : memref<5x320xf32, #tpu.memory_space<vmem>>, vector<1x320xf32>
    %c0_60 = arith.constant 0 : index
    %c98 = arith.constant 98 : index
    %149 = vector.load %arg5[%c0_60, %c98] : memref<4x418xf32, #tpu.memory_space<vmem>>, vector<4x320xf32>
    %150 = vector.broadcast %148 : vector<1x320xf32> to vector<4x320xf32>
    %151 = arith.mulf %149, %150 : vector<4x320xf32>
    %c0_61 = arith.constant 0 : index
    %c4_62 = arith.constant 4 : index
    %152 = vector.load %arg2[%c0_61, %c4_62] : memref<4x25xf32, #tpu.memory_space<vmem>>, vector<4x1xf32>
    %153 = vector.extract_strided_slice %151 {offsets = [0, 0], sizes = [4, 256], strides = [1, 1]} : vector<4x320xf32> to vector<4x256xf32>
    %154 = vector.broadcast %152 : vector<4x1xf32> to vector<4x256xf32>
    %155 = arith.mulf %154, %153 : vector<4x256xf32>
    %156 = arith.addf %147, %155 : vector<4x256xf32>
    %c0_63 = arith.constant 0 : index
    %c9 = arith.constant 9 : index
    %157 = vector.load %arg2[%c0_63, %c9] : memref<4x25xf32, #tpu.memory_space<vmem>>, vector<4x1xf32>
    %158 = vector.extract_strided_slice %151 {offsets = [0, 16], sizes = [4, 256], strides = [1, 1]} : vector<4x320xf32> to vector<4x256xf32>
    %159 = vector.broadcast %157 : vector<4x1xf32> to vector<4x256xf32>
    %160 = arith.mulf %159, %158 : vector<4x256xf32>
    %161 = arith.addf %156, %160 : vector<4x256xf32>
    %c0_64 = arith.constant 0 : index
    %c14 = arith.constant 14 : index
    %162 = vector.load %arg2[%c0_64, %c14] : memref<4x25xf32, #tpu.memory_space<vmem>>, vector<4x1xf32>
    %163 = vector.extract_strided_slice %151 {offsets = [0, 32], sizes = [4, 256], strides = [1, 1]} : vector<4x320xf32> to vector<4x256xf32>
    %164 = vector.broadcast %162 : vector<4x1xf32> to vector<4x256xf32>
    %165 = arith.mulf %164, %163 : vector<4x256xf32>
    %166 = arith.addf %161, %165 : vector<4x256xf32>
    %c0_65 = arith.constant 0 : index
    %c19 = arith.constant 19 : index
    %167 = vector.load %arg2[%c0_65, %c19] : memref<4x25xf32, #tpu.memory_space<vmem>>, vector<4x1xf32>
    %168 = vector.extract_strided_slice %151 {offsets = [0, 48], sizes = [4, 256], strides = [1, 1]} : vector<4x320xf32> to vector<4x256xf32>
    %169 = vector.broadcast %167 : vector<4x1xf32> to vector<4x256xf32>
    %170 = arith.mulf %169, %168 : vector<4x256xf32>
    %171 = arith.addf %166, %170 : vector<4x256xf32>
    %c0_66 = arith.constant 0 : index
    %c24 = arith.constant 24 : index
    %172 = vector.load %arg2[%c0_66, %c24] : memref<4x25xf32, #tpu.memory_space<vmem>>, vector<4x1xf32>
    %173 = vector.extract_strided_slice %151 {offsets = [0, 64], sizes = [4, 256], strides = [1, 1]} : vector<4x320xf32> to vector<4x256xf32>
    %174 = vector.broadcast %172 : vector<4x1xf32> to vector<4x256xf32>
    %175 = arith.mulf %174, %173 : vector<4x256xf32>
    %176 = arith.addf %171, %175 : vector<4x256xf32>
    %177 = vector.extract_strided_slice %176 {offsets = [0, 0], sizes = [2, 256], strides = [1, 1]} : vector<4x256xf32> to vector<2x256xf32>
    %178 = vector.extract_strided_slice %176 {offsets = [2, 0], sizes = [2, 256], strides = [1, 1]} : vector<4x256xf32> to vector<2x256xf32>
    %179 = arith.addf %177, %178 : vector<2x256xf32>
    %180 = arith.negf %179 : vector<2x256xf32>
    %181 = math.exp %180 : vector<2x256xf32>
    %cst_67 = arith.constant 1.000000e+00 : f32
    %182 = vector.broadcast %cst_67 : f32 to vector<2x256xf32>
    %183 = arith.addf %182, %181 : vector<2x256xf32>
    %184 = arith.divf %182, %183 : vector<2x256xf32>
    %185 = vector.extract_strided_slice %184 {offsets = [0, 0], sizes = [1, 256], strides = [1, 1]} : vector<2x256xf32> to vector<1x256xf32>
    %c0_68 = arith.constant 0 : index
    %c0_69 = arith.constant 0 : index
    %c0_70 = arith.constant 0 : index
    %186 = vector.load %arg3[%c0_68, %c0_69, %c0_70] : memref<2x4x256xf32, #tpu.memory_space<vmem>>, vector<1x4x256xf32>
    %187 = vector.shape_cast %186 : vector<1x4x256xf32> to vector<4x256xf32>
    %188 = vector.broadcast %185 : vector<1x256xf32> to vector<4x256xf32>
    %189 = arith.mulf %187, %188 : vector<4x256xf32>
    %c0_71 = arith.constant 0 : index
    %c0_72 = arith.constant 0 : index
    %c0_73 = arith.constant 0 : index
    %190 = vector.load %arg4[%c0_71, %c0_72, %c0_73] : memref<2x4x256xf32, #tpu.memory_space<vmem>>, vector<1x4x256xf32>
    %191 = vector.shape_cast %190 : vector<1x4x256xf32> to vector<4x256xf32>
    %192 = vector.shape_cast %189 : vector<4x256xf32> to vector<1x4x256xf32>
    tpu.vector_store %arg4[%c0_71, %c0_72, %c0_73], %192 {strides = array<i32>} : memref<2x4x256xf32, #tpu.memory_space<vmem>>, vector<1x4x256xf32>,
    %193 = vector.extract_strided_slice %184 {offsets = [1, 0], sizes = [1, 256], strides = [1, 1]} : vector<2x256xf32> to vector<1x256xf32>
    %c1_74 = arith.constant 1 : index
    %c0_75 = arith.constant 0 : index
    %c0_76 = arith.constant 0 : index
    %194 = vector.load %arg3[%c1_74, %c0_75, %c0_76] : memref<2x4x256xf32, #tpu.memory_space<vmem>>, vector<1x4x256xf32>
    %195 = vector.shape_cast %194 : vector<1x4x256xf32> to vector<4x256xf32>
    %196 = vector.broadcast %193 : vector<1x256xf32> to vector<4x256xf32>
    %197 = arith.mulf %195, %196 : vector<4x256xf32>
    %c1_77 = arith.constant 1 : index
    %c0_78 = arith.constant 0 : index
    %c0_79 = arith.constant 0 : index
    %198 = vector.load %arg4[%c1_77, %c0_78, %c0_79] : memref<2x4x256xf32, #tpu.memory_space<vmem>>, vector<1x4x256xf32>
    %199 = vector.shape_cast %198 : vector<1x4x256xf32> to vector<4x256xf32>
    %200 = vector.shape_cast %197 : vector<4x256xf32> to vector<1x4x256xf32>
    tpu.vector_store %arg4[%c1_77, %c0_78, %c0_79], %200 {strides = array<i32>} : memref<2x4x256xf32, #tpu.memory_space<vmem>>, vector<1x4x256xf32>,
    return
  }
  func.func @transform_0(%arg0: i32) -> (i32, i32) {
    %c0_i32 = arith.constant 0 : i32
    %c0_i32_0 = arith.constant 0 : i32
    %c0_i32_1 = arith.constant 0 : i32
    return %c0_i32, %c0_i32_0 : i32, i32
  }
  func.func @transform_1(%arg0: i32) -> (i32, i32) {
    %c0_i32 = arith.constant 0 : i32
    %c0_i32_0 = arith.constant 0 : i32
    %c0_i32_1 = arith.constant 0 : i32
    return %c0_i32, %c0_i32_0 : i32, i32
  }
  func.func @transform_2(%arg0: i32) -> (i32, i32, i32) {
    %c0_i32 = arith.constant 0 : i32
    %c0_i32_0 = arith.constant 0 : i32
    %c0_i32_1 = arith.constant 0 : i32
    return %arg0, %c0_i32, %c0_i32_0 : i32, i32, i32
  }
  func.func @transform_3(%arg0: i32) -> (i32, i32, i32) {
    %c0_i32 = arith.constant 0 : i32
    %c0_i32_0 = arith.constant 0 : i32
    %c0_i32_1 = arith.constant 0 : i32
    return %arg0, %c0_i32, %c0_i32_0 : i32, i32, i32
  }
}

</mosaic_0001>

<bundles_post_ra>
// kernel: tpu_custom_call.1
= control target key start
LH: loop header
LB: loop body
LE: loop exit
PB: predicated region body
PF: predicated region fallthrough
CT: control target
= control target key end

     0   :  { %8 = vsyncpa [#allocation4], 0  ;;  %s1666_s0 = inlined_call_operand.hbm [shape: f32[5,320], index: 0, kind: input, shape index: {}]   ;;  %s1667_s1 = inlined_call_operand.hbm [shape: f32[4,25], index: 1, kind: input, shape index: {}]   ;;  %s1668_s2 = inlined_call_operand.hbm [shape: f32[2,4,256], index: 2, kind: input, shape index: {}]   ;;  %s1669_s3 = inlined_call_operand.hbm [shape: f32[2,4,256], index: 3, kind: output, shape index: {}]  }
   0x1   :  { %9 = vsyncpa [#allocation7], 0 }
   0x2   :  { %10 = vsyncpa [#allocation5], 0  ;;  %s1165_s12 = smov [#allocation6]   ;;  %s1166_s14 = smov [#allocation3]  }
   0x3   :  { %s27_s13 = sshll.u32 %s1165_s12, 4  ;;  %s17_s15 = sshll.u32 %s1166_s14, 4  ;;  %s28_s13 = int_to_ptr.vmem [resolvable:$true] %s27_s13  ;;  %s18_s15 = int_to_ptr.vmem [resolvable:$true] %s17_s15 }
   0x4   :  { %s1071_s18 = scalar_lea.hbm %s1667_s1, 64 }
   0x5   :  { %p1072_p0 = scmp.ne.s32.totalorder %s1667_s1, %s1071_s18  ;;  %p1075_p1 = scmp.lt.u32.totalorder %s1071_s18, %s1667_s1 }
   0x7   :  { %p1077_p2 = pnand %p1075_p1, %p1072_p0 }
   0x9   :  { %1080 = shalt.err (!%p1077_p2)
}
   0xa   :  { %s1081_s23 = scalar_lea.vmem %s28_s13, 64  ;;  %p1086_p4 = scmp.lt.s32.totalorder %s28_s13, %s28_s13 }
   0xb   :  { %p1082_p3 = scmp.ne.s32.totalorder %s28_s13, %s1081_s23  ;;  %p1087_p5 = scmp.lt.s32.totalorder %s1081_s23, %s1081_s23 }
   0xd   :  { %p1088_p6 = por %p1087_p5, %p1086_p4 }
   0xf   :  { %p1089_p7 = pnand %p1088_p6, %p1082_p3 }
  0x11   :  { %1092 = shalt.err (!%p1089_p7)
}
  0x12   :  { %30 = dma.hbm_to_vmem [thread:$0]  %s1667_s1, 64, %s28_s13, [#allocation7]  }
  0x13   :  { %s1093_s28 = scalar_lea.hbm %s1666_s0, 384 }
  0x14   :  { %p1094_p8 = scmp.ne.s32.totalorder %s1666_s0, %s1093_s28  ;;  %p1097_p9 = scmp.lt.u32.totalorder %s1093_s28, %s1666_s0 }
  0x16   :  { %p1099_p10 = pnand %p1097_p9, %p1094_p8 }
  0x18   :  { %1102 = shalt.err (!%p1099_p10)
}
  0x19   :  { %s1103_s6 = scalar_lea.vmem %s18_s15, 384  ;;  %p1108_p12 = scmp.lt.s32.totalorder %s18_s15, %s18_s15 }
  0x1a   :  { %p1104_p11 = scmp.ne.s32.totalorder %s18_s15, %s1103_s6  ;;  %p1109_p13 = scmp.lt.s32.totalorder %s1103_s6, %s1103_s6 }
  0x1c   :  { %p1110_p0 = por %p1109_p13, %p1108_p12 }
  0x1e   :  { %p1111_p1 = pnand %p1110_p0, %p1104_p11 }
  0x20   :  { %1114 = shalt.err (!%p1111_p1)
}
  0x21   :  { %20 = dma.hbm_to_vmem [thread:$0]  %s1666_s0, 384, %s18_s15, [#allocation4]  }
  0x22   :  { %s1167_s8 = smov [#allocation8]   ;;  %s1115_s12 = scalar_lea.hbm %s1668_s2, 256 }
  0x23   :  { %s36_s9 = sshll.u32 %s1167_s8, 4  ;;  %p1116_p2 = scmp.ne.s32.totalorder %s1668_s2, %s1115_s12  ;;  %s37_s9 = int_to_ptr.vmem [resolvable:$true] %s36_s9 }
  0x24   :  { %p1119_p3 = scmp.lt.u32.totalorder %s1115_s12, %s1668_s2 }
  0x26   :  { %p1121_p4 = pnand %p1119_p3, %p1116_p2 }
  0x28   :  { %1124 = shalt.err (!%p1121_p4)
}
  0x29   :  { %s1125_s18 = scalar_lea.vmem %s37_s9, 256  ;;  %p1130_p6 = scmp.lt.s32.totalorder %s37_s9, %s37_s9 }
  0x2a   :  { %p1126_p5 = scmp.ne.s32.totalorder %s37_s9, %s1125_s18  ;;  %p1131_p7 = scmp.lt.s32.totalorder %s1125_s18, %s1125_s18 }
  0x2c   :  { %p1132_p8 = por %p1131_p7, %p1130_p6 }
  0x2e   :  { %p1133_p9 = pnand %p1132_p8, %p1126_p5 }
  0x30   :  { %1136 = shalt.err (!%p1133_p9)
}
  0x31   :  { %s1168_s0 = smov 128   ;;  %s1169_s15 = smov 8  }
  0x32   :  { %42 = dma.hbm_to_vmem [thread:$0]  %s1668_s2, 256, %s37_s9, [#allocation7], %s1168_s0, %s1168_s0, %s1169_s15  }
  0x33   :  { %1159 = dma.done.wait [#allocation4], 384  }
  0x34   :  { %1160 = vsyncadd [#allocation4], 4294966912 }
  0x35   :  { %1161 = dma.done.wait [#allocation7], 320  }
  0x36   :  { %1162 = vsyncadd [#allocation7], 4294966976  ;;  %v101_v0 = vlaneseq  ;;  %v1170_v1 = vmov 0   ;;  %v1171_v2 = vmov 1966171168   ;;  %v1172_v5 = vmov 5  }
  0x37   :  { %1035 = vset.pattern.permute.xlu1 %v1170_v1  ;;  %v99_v3 = vunpack.c.l.s4 %v1171_v2  ;;  %1036 = vset.pattern.permute.xlu0 %v1172_v5  ;;  %vm61_vm0 = vcmask 1043456   ;;  %v249_v10 = vld [vmem:[#allocation6] sm:$0xf]  ;;  %v1290_v12 = vld [vmem:[#allocation3] ss:$8 sm:$0x7] }
  0x38   :  { %v102_v4 = vshrl.u32 %v101_v0, 7  ;;  %v56_v13 = vld [vmem:[#allocation8] sm:$0xff]  ;;  %252 = vperm.xlu1 %1035, %v249_v10   ;;  %v140_v18 = vld [vmem:[#allocation8 + $0x8] sm:$0xff]  ;;  %s1173_s2 = smov 94   ;;  %v294_v27 = vld [vmem:[#allocation6] sm:$0xf] }
  0x39   :  { %v100_v6 = vunpack.c.0.s8 %v99_v3  ;;  %v59_v15 = vcombine.high %v56_v13, %v56_v13  ;;  %v62_v16 = vsel %vm61_vm0, %v56_v13, 0.0  ;;  %v81_v17 = vsel %vm61_vm0, %v56_v13, -inf  ;;  %v273_v32 = vld [vmem:[#allocation6] sm:$0xf]  ;;  %s1179_s21 = smov 95   ;;  %s1181_s22 = smov 96  }
  0x3a   :  { %v1282_v7 = vsub.s32 2, %v102_v4  ;;  %v1284_v8 = vsub.s32 0, %v102_v4  ;;  %v1286_v9 = vsub.s32 1, %v102_v4  ;;  %v63_v19 = vrot.slane %v62_v16, 4  ;;  %v315_v50 = vld [vmem:[#allocation6] sm:$0xf] }
  0x3b   :  { %v1288_v11 = vsub.s32 %v100_v6, %v102_v4  ;;  %v82_v20 = vrot.slane %v81_v17, 4  ;;  %v143_v21 = vcombine.high %v140_v18, %v140_v18  ;;  %v145_v22 = vsel %vm61_vm0, %v140_v18, 0.0  ;;  %s1183_s23 = smov 97   ;;  %s1185_s24 = smov 98  }
  0x3c   :  { %v233_v14 = vrot.slane %v1290_v12, %v1282_v7  ;;  %v69_v23 = vsel %vm61_vm0, %v59_v15, 0.0  ;;  %v88_v24 = vsel %vm61_vm0, %v59_v15, -inf  ;;  %v146_v25 = vrot.slane %v145_v22, 4  ;;  %s1195_s25 = smov 34   ;;  %s1196_s26 = smov 2  }
  0x3d   :  { %v164_v26 = vsel %vm61_vm0, %v140_v18, -inf  ;;  %v64_v28 = vadd.f32 %v63_v19, %v62_v16  ;;  %v70_v29 = vrot.slane %v69_v23, 4  ;;  %v83_v30 = vmax.f32 %v81_v17, %v82_v20  ;;  %v337_v16 = vld [vmem:[#allocation6] sm:$0xf]  ;;  %s1197_s27 = smov 18   ;;  %s1198_s28 = smov 16  }
  0x3e   :  { %237 = vrot.lane.b32.xlu0 %v233_v14, %s1173_s2  ;;  %v89_v31 = vrot.slane %v88_v24, 4  ;;  %v147_v33 = vadd.f32 %v146_v25, %v145_v22  ;;  %v152_v34 = vsel %vm61_vm0, %v143_v21, 0.0  ;;  %v165_v35 = vrot.slane %v164_v26, 4  ;;  %s1199_s29 = smov 33   ;;  %s1200_s30 = smov 17  }
  0x3f   :  { %v171_v36 = vsel %vm61_vm0, %v143_v21, -inf  ;;  %v1174_v37 = vmov 10   ;;  %v65_v38 = vrot.slane %v64_v28, 2  ;;  %v71_v39 = vadd.f32 %v70_v29, %v69_v23  ;;  %v500_v29 = vld [vmem:[#allocation3 + $0x2] ss:$8 sm:$0x7] }
  0x40   :  { %1037 = vset.pattern.permute.xlu1 %v1174_v37  ;;  %v84_v40 = vrot.slane %v83_v30, 2  ;;  %v90_v41 = vmax.f32 %v88_v24, %v89_v31  ;;  %v148_v42 = vrot.slane %v147_v33, 2  ;;  %v153_v43 = vrot.slane %v152_v34, 4  ;;  %s1201_s4 = smov 114   ;;  %s1202_s5 = smov 1  }
  0x41   :  { %297 = vperm.xlu1 %1037, %v294_v27   ;;  %v166_v44 = vmax.f32 %v164_v26, %v165_v35  ;;  %v172_v45 = vrot.slane %v171_v36, 4  ;;  %v66_v46 = vadd.f32 %v65_v38, %v64_v28  ;;  %v72_v47 = vrot.slane %v71_v39, 2  ;;  %s1203_s6 = smov 32   ;;  %s1204_s1 = smov 113  }
  0x42   :  { %276 = vperm.xlu0 %1036, %v273_v32   ;;  %v85_v48 = vmax.f32 %v83_v30, %v84_v40  ;;  %v91_v49 = vrot.slane %v90_v41, 2  ;;  %v149_v51 = vadd.f32 %v148_v42, %v147_v33  ;;  %v154_v52 = vadd.f32 %v153_v43, %v152_v34  ;;  %s1205_s7 = smov 112   ;;  %s1206_s8 = smov 31  }
  0x43   :  { %v167_v53 = vrot.slane %v166_v44, 2  ;;  %v173_v54 = vmax.f32 %v171_v36, %v172_v45  ;;  %v67_v55 = vrot.slane %v66_v46, 1  ;;  %v73_v56 = vadd.f32 %v72_v47, %v71_v39  ;;  %s1208_s9 = smov 15   ;;  %s1210_s10 = smov 127  }
  0x44   :  { %v86_v57 = vrot.slane %v85_v48, 1  ;;  %v92_v58 = vmax.f32 %v90_v41, %v91_v49  ;;  %v1175_v59 = vmov 15   ;;  %vm1304_vm1 = vcmp.lt.s32.totalorder %v101_v0, 256  ;;  %v359_v0 = vld [vmem:[#allocation3 + $0x1] ss:$8 sm:$0x7] }
  0x45   :  { %1038 = vset.pattern.permute.xlu1 %v1175_v59  ;;  %v150_v61 = vrot.slane %v149_v51, 1  ;;  %v155_v62 = vrot.slane %v154_v52, 2  ;;  %v168_v63 = vmax.f32 %v166_v44, %v167_v53  ;;  %v174_v1 = vrot.slane %v173_v54, 2  ;;  %v630_v53 = vld [vmem:[#allocation3 + $0x3] ss:$8 sm:$0x7] }
  0x46   :  { %318 = vperm.xlu1 %1038, %v315_v50   ;;  %v1176_v2 = vmov 12   ;;  %v68_v3 = vadd.f32 %v67_v55, %v66_v46  ;;  %v74_v4 = vrot.slane %v73_v56, 1  ;;  %v87_v5 = vmax.f32 %v85_v48, %v86_v57  ;;  %v390_v48 = vld [vmem:[#allocation6] sm:$0xf]  ;;  %s1213_s11 = smov 111   ;;  %s1216_s12 = smov 30  }
  0x47   :  { %1047 = vset.pattern.permute.xlu0 %v1176_v2  ;;  %v93_v6 = vrot.slane %v92_v58, 1  ;;  %v151_v10 = vadd.f32 %v150_v61, %v149_v51  ;;  %v156_v13 = vadd.f32 %v155_v62, %v154_v52  ;;  %v169_v14 = vrot.slane %v168_v63, 1  ;;  %v414_v55 = vld [vmem:[#allocation6] sm:$0xf]  ;;  %s1218_s13 = smov 14   ;;  %s1219_s14 = smov 126  }
  0x48   :  { %v175_v15 = vmax.f32 %v173_v54, %v174_v1  ;;  %v75_v17 = vadd.f32 %v74_v4, %v73_v56  ;;  %v76_v18 = vmul.f32 0.25, %v68_v3  ;;  %v225_v20 = vrot.slane %v1290_v12, %v1284_v8  ;;  %v576_v1 = vld [vmem:[#allocation6] sm:$0xf]  ;;  %s1220_s16 = smov 110   ;;  %s1221_s17 = smov [#allocation9]  }
  0x49   :  { %v94_v19 = vmax.f32 %v92_v58, %v93_v6  ;;  %v157_v21 = vrot.slane %v156_v13, 1  ;;  %v170_v22 = vmax.f32 %v168_v63, %v169_v14  ;;  %v1177_v24 = vmov 20   ;;  %v435_v4 = vld [vmem:[#allocation6] sm:$0xf]  ;;  %s963_s18 = sshll.u32 %s1221_s17, 4  ;;  %s964_s18 = int_to_ptr.vmem [resolvable:$true] %s963_s18 }
  0x4a   :  { %v176_v23 = vrot.slane %v175_v15, 1  ;;  %1039 = vset.pattern.permute.xlu1 %v1177_v24  ;;  %v77_v25 = vmul.f32 0.25, %v75_v17  ;;  %v229_v27 = vrot.slane %v1290_v12, %v1286_v9  ;;  %v366_v28 = vrot.slane %v359_v0, %v1284_v8  ;;  %v478_v14 = vld [vmem:[#allocation6] sm:$0xf]  ;;  %s1137_s19 = scalar_lea.vmem %s964_s18, 256  ;;  %p1142_p11 = scmp.lt.s32.totalorder %s964_s18, %s964_s18 }
  0x4b   :  { %v121_v26 = vcombine.low %v87_v5, %v94_v19  ;;  %340 = vperm.xlu1 %1039, %v337_v16   ;;  %v158_v30 = vadd.f32 %v157_v21, %v156_v13  ;;  %v159_v31 = vmul.f32 0.25, %v151_v10  ;;  %v370_v33 = vrot.slane %v359_v0, %v1286_v9  ;;  %v456_v13 = vld [vmem:[#allocation6] sm:$0xf]  ;;  %p1138_p10 = scmp.ne.s32.totalorder %s964_s18, %s1137_s19  ;;  %p1143_p12 = scmp.lt.s32.totalorder %s1137_s19, %s1137_s19 }
  0x4c   :  { %v177_v32 = vmax.f32 %v175_v15, %v176_v23  ;;  %v97_v34 = vcombine.low %v76_v18, %v77_v25  ;;  %v234_v36 = vcombine.low %v225_v20, %v229_v27  ;;  %v374_v37 = vrot.slane %v359_v0, %v1282_v7  ;;  %v531_v16 = vld [vmem:[#allocation6] sm:$0xf] }
  0x4d   :  { %v128_v35 = vrot.slane %v121_v26, %v1288_v11  ;;  %v160_v38 = vmul.f32 0.25, %v158_v30  ;;  %v375_v40 = vcombine.low %v366_v28, %v370_v33  ;;  %v507_v41 = vrot.slane %v500_v29, %v1284_v8  ;;  %v555_v17 = vld [vmem:[#allocation6] sm:$0xf]  ;;  %p1144_p13 = por %p1143_p12, %p1142_p11 }
  0x4e   :  { %v200_v39 = vcombine.low %v170_v22, %v177_v32  ;;  %v104_v12 = vrot.slane %v97_v34, %v1288_v11  ;;  %235 = vrot.lane.b32.xlu0 %v234_v36, %s1173_s2  ;;  %v1178_v43 = vmov 1   ;;  %v511_v44 = vrot.slane %v500_v29, %v1286_v9  ;;  %v587_v19 = vld [vmem:[#allocation6] sm:$0xf] }
  0x4f   :  { %v135_v42 = vrot.slane %v128_v35, %v1288_v11  ;;  %1040 = vset.pattern.permute.xlu1 %v1178_v43  ;;  %v180_v45 = vcombine.low %v159_v31, %v160_v38  ;;  %vm52_vm2 = vcmask 1044208   ;;  %vm54_vm3 = vcmask 273408   ;;  %v660_v21 = vld [vmem:[#allocation6] sm:$0xf]  ;;  %p1145_p0 = pnand %p1144_p13, %p1138_p10 }
  0x50   :  { %v207_v46 = vrot.slane %v200_v39, %v1288_v11  ;;  %376 = vrot.lane.b32.xlu1 %v375_v40, %s1179_s21  ;;  %v111_v47 = vrot.slane %v104_v12, %v1288_v11  ;;  %v516_v51 = vcombine.low %v507_v41, %v511_v44  ;;  %v1180_v54 = vmov 0.0  }
  0x51   :  { %138 = vst.msk [vmem:[#allocation2 + $0x6] ss:$4 sm:$0x3] %vm1304_vm1, %v135_v42  ;;  %v187_v49 = vrot.slane %v180_v45, %v1288_v11  ;;  %v645_v56 = vrot.slane %v630_v53, %v1282_v7  ;;  %v1182_v57 = vmov 6   ;;  %v515_v58 = vrot.slane %v500_v29, %v1282_v7 }
  0x52   :  { %v214_v50 = vrot.slane %v207_v46, %v1288_v11  ;;  %118 = vst.msk [vmem:[#allocation2 + $0x4] ss:$4 sm:$0x3] %vm1304_vm1, %v111_v47  ;;  %378 = vrot.lane.b32.xlu0 %v374_v37, %s1179_s21  ;;  %v637_v59 = vrot.slane %v630_v53, %v1284_v8  ;;  %v641_v61 = vrot.slane %v630_v53, %v1286_v9  ;;  %v1184_v63 = vmov 11  }
  0x53   :  { %v194_v52 = vrot.slane %v187_v49, %v1288_v11  ;;  %53 = vst.msk [vmem:[#allocation2] sm:$0xf] %vm52_vm2, %v1180_v54  ;;  %v769_v11 = vld [vmem:[#allocation3 + $0x4] ss:$8 sm:$0x7]  ;;  %v1186_v6 = vmov 22  }
  0x54   :  { %217 = vst.msk [vmem:[#allocation2 + $0x7] ss:$4 sm:$0x3] %vm1304_vm1, %v214_v50  ;;  %393 = vperm.xlu1 %1040, %v390_v48   ;;  %v784_v60 = vrot.slane %v769_v11, %v1282_v7  ;;  %v646_v62 = vcombine.low %v637_v59, %v641_v61  ;;  %v776_v2 = vrot.slane %v769_v11, %v1284_v8  ;;  %v609_v7 = vld [vmem:[#allocation6] sm:$0xf]  ;;  %v1187_v10 = vmov 16  }
  0x55   :  { %55 = vst.msk [vmem:[#allocation2 + $0xc] sm:$0xf] %vm54_vm3, %v1180_v54  ;;  %v780_v3 = vrot.slane %v769_v11, %v1286_v9  ;;  %v1188_v15 = vmov 21   ;;  %v1189_v0 = vmov 2   ;;  %v1190_v18 = vmov 7  }
  0x56   :  { %197 = vst.msk [vmem:[#allocation2 + $0x5] ss:$4 sm:$0x3] %vm1304_vm1, %v194_v52  ;;  %517 = vrot.lane.b32.xlu0 %v516_v51, %s1181_s22  ;;  %v1191_v20 = vmov 17   ;;  %v1192_v22 = vmov 3   ;;  %v1193_v23 = vmov 13  }
  0x57   :  { %v785_v5 = vcombine.low %v776_v2, %v780_v3  ;;  %v1194_v24 = vmov 8   ;;  %vm241_vm4 = vcmask 769024   ;;  %vm523_vm5 = vcmask 785408  }
  0x58   :  { %1041 = vset.pattern.permute.xlu1 %v1182_v57  ;;  %vm382_vm6 = vcmask 777216   ;;  %vm490_vm7 = vcmask 793600   ;;  %vm349_vm8 = vcmask 801792   ;;  %vm285_vm9 = vcmask 146432  }
  0x59   :  { %417 = vperm.xlu1 %1041, %v414_v55   ;;  %vm306_vm10 = vcmask 15360   ;;  %vm405_vm11 = vcmask 269312   ;;  %vm426_vm12 = vcmask 138240   ;;  %vm264_vm13 = vcmask 277504  }
  0x5a   :  { %649 = vrot.lane.b32.xlu0 %v645_v56, %s1183_s23  ;;  %vm546_vm14 = vcmask 261120   ;;  %vm328_vm15 = vcmask 932864   ;;  %vm447_vm1 = vcmask 7168   ;;  %vm469_vm2 = vcmask 924672  }
  0x5b   :  { %vm567_vm3 = vcmask 130048  }
  0x5d   :  { %519 = vrot.lane.b32.xlu1 %v515_v58, %s1181_s22  ;;  %v1357_v31 = vld [vmem:[#allocation2] sm:$0xff]  ;;  %v1370_v45 = vld [vmem:[#allocation2 + $0x8] sm:$0xff] }
  0x5e   :  { %1042 = vset.pattern.permute.xlu1 %v1184_v63  ;;  %788 = vrot.lane.b32.xlu0 %v784_v60, %s1185_s24 }
  0x61   :  { %647 = vrot.lane.b32.xlu1 %v646_v62, %s1183_s23 }
  0x62   :  { %579 = vperm.xlu0 %1047, %v576_v1  }
  0x65   :  { %438 = vperm.xlu1 %1042, %v435_v4  }
  0x66   :  { %1049 = vset.pattern.permute.xlu0 %v1186_v6 }
  0x67   :  { %612 = vperm.xlu0 %1049, %v609_v7  }
  0x69   :  { %786 = vrot.lane.b32.xlu1 %v785_v5, %s1185_s24 }
  0x6a   :  { %1043 = vset.pattern.permute.xlu1 %v1187_v10 }
  0x6b   :  { %1051 = vset.pattern.permute.xlu0 %v1194_v24 }
  0x6d   :  { %459 = vperm.xlu1 %1043, %v456_v13  }
  0x71   :  { %1044 = vset.pattern.permute.xlu1 %v1188_v15  ;;  %v705_v15 = vld [vmem:[#allocation6] sm:$0xf] }
  0x72   :  { %481 = vperm.xlu1 %1044, %v478_v14  }
  0x76   :  { %1045 = vset.pattern.permute.xlu1 %v1189_v0 }
  0x77   :  { %534 = vperm.xlu1 %1045, %v531_v16  }
  0x7b   :  { %1046 = vset.pattern.permute.xlu1 %v1190_v18  ;;  %v1207_v18 = vmov 18  }
  0x7c   :  { %558 = vperm.xlu1 %1046, %v555_v17  }
  0x80   :  { %1048 = vset.pattern.permute.xlu1 %v1191_v20 }
  0x81   :  { %590 = vperm.xlu1 %1048, %v587_v19   ;;  %v727_v19 = vld [vmem:[#allocation6] sm:$0xf] }
  0x85   :  { %1050 = vset.pattern.permute.xlu1 %v1192_v22 }
  0x86   :  { %663 = vperm.xlu1 %1050, %v660_v21  }
  0x8a   :  { %1052 = vset.pattern.permute.xlu1 %v1193_v23 }
  0xb0   :  { %v238_v26 = vpop.permute.xlu0 %237 }
  0xb1   :  { %v240_v37 = vrot.slane %v238_v26, 4 }
  0xb7   :  { %v1349_v25 = vpop.permute.xlu1 %252 }
  0xc0   :  { %v1351_v27 = vpop.permute.xlu1 %297 }
  0xc1   :  { %v1353_v28 = vpop.permute.xlu0 %276 }
  0xc5   :  { %v1355_v29 = vpop.permute.xlu1 %318  ;;  %v236_v30 = vpop.permute.xlu0 %235 }
  0xc6   :  { %v239_v32 = vrot.slane %v236_v30, 4 }
  0xc8   :  { %v242_v33 = vsel %vm241_vm4, %v239_v32, %v236_v30  ;;  %v243_v41 = vsel %vm61_vm0, %v239_v32, %v240_v37  ;;  %v748_v30 = vld [vmem:[#allocation6] sm:$0xf]  ;;  %v1211_v37 = vmov 4  }
  0xc9   :  { %v247_v34 = vmul.f32 %v242_v33, %v1357_v31  ;;  %v379_v35 = vpop.permute.xlu0 %378  ;;  %v244_v46 = vsel %vm241_vm4, %v243_v41, %v238_v26  ;;  %v1209_v26 = vmov 23   ;;  %v684_v32 = vld [vmem:[#allocation6] sm:$0xf]  ;;  %v1214_v41 = vmov 9  }
  0xca   :  { %v1361_v36 = vpop.permute.xlu1 %340  ;;  %v1379_v49 = vmul.f32 %v244_v46, %v1370_v45  ;;  %v381_v51 = vrot.slane %v379_v35, 4 }
  0xcb   :  { %258 = vrot.lane.b32.xlu1 %v247_v34, %s1195_s25  ;;  %300 = vrot.lane.b32.xlu0 %v247_v34, %s1196_s26  ;;  %v257_v2 = vcombine.high %v247_v34, %v247_v34 }
  0xcc   :  { %v321_v16 = vcombine.high %v1379_v49, %v1379_v49 }
  0xcd   :  { %v518_v38 = vpop.permute.xlu0 %517 }
  0xce   :  { %v521_v39 = vrot.slane %v518_v38, 4  ;;  %v377_v40 = vpop.permute.xlu1 %376 }
  0xcf   :  { %v380_v12 = vrot.slane %v377_v40, 4  ;;  %279 = vrot.lane.b32.xlu1 %v247_v34, %s1197_s27 }
  0xd0   :  { %v524_v42 = vsel %vm523_vm5, %v521_v39, %v518_v38  ;;  %v799_v38 = vld [vmem:[#allocation6] sm:$0xf] }
  0xd1   :  { %v529_v43 = vmul.f32 %v524_v42, %v1357_v31  ;;  %v383_v44 = vsel %vm382_vm6, %v380_v12, %v377_v40  ;;  %v1381_v50 = vpop.permute.xlu0 %649  ;;  %v384_v53 = vsel %vm61_vm0, %v380_v12, %v381_v51  ;;  %v823_v12 = vld [vmem:[#allocation6] sm:$0xf] }
  0xd2   :  { %v388_v47 = vmul.f32 %v383_v44, %v1357_v31  ;;  %v385_v57 = vsel %vm382_vm6, %v384_v53, %v379_v35  ;;  %v652_v20 = vrot.slane %v1381_v50, 4 }
  0xd3   :  { %v1374_v48 = vpop.permute.xlu1 %393  ;;  %561 = vrot.lane.b32.xlu1 %v529_v43, %s1198_s28  ;;  %v539_v11 = vcombine.high %v529_v43, %v529_v43  ;;  %v389_v61 = vmul.f32 %v385_v57, %v1370_v45 }
  0xd4   :  { %399 = vrot.lane.b32.xlu0 %v388_v47, %s1199_s29  ;;  %v398_v3 = vcombine.high %v388_v47, %v388_v47 }
  0xd5   :  { %v1391_v55 = vpop.permute.xlu0 %788  ;;  %v462_v21 = vcombine.high %v389_v61, %v389_v61 }
  0xd7   :  { %262 = vrot.lane.b32.xlu1 %v1379_v49, %s1195_s25 }
  0xd8   :  { %v1385_v52 = vpop.permute.xlu1 %417  ;;  %420 = vrot.lane.b32.xlu0 %v388_v47, %s1200_s30 }
  0xdb   :  { %324 = vrot.lane.b32.xlu1 %v1379_v49, %s1201_s4 }
  0xdc   :  { %v520_v54 = vpop.permute.xlu1 %519  ;;  %441 = vrot.lane.b32.xlu0 %v388_v47, %s1202_s5  ;;  %v1215_v47 = vmov 14  }
  0xdd   :  { %v522_v56 = vrot.slane %v520_v54, 4 }
  0xdf   :  { %v525_v58 = vsel %vm61_vm0, %v521_v39, %v522_v56  ;;  %345 = vrot.lane.b32.xlu1 %v1379_v49, %s1185_s24  ;;  %v1212_v39 = vmov 24  }
  0xe0   :  { %v526_v59 = vsel %vm523_vm5, %v525_v58, %v520_v54  ;;  %540 = vrot.lane.b32.xlu0 %v529_v43, %s1203_s6  ;;  %v648_v5 = vpop.permute.xlu1 %647 }
  0xe1   :  { %v530_v60 = vmul.f32 %v526_v59, %v1370_v45  ;;  %v580_v62 = vpop.permute.xlu0 %579  ;;  %v651_v7 = vrot.slane %v648_v5, 4 }
  0xe2   :  { %v1401_v63 = vmul.f32 %v580_v62, %v539_v11 }
  0xe3   :  { %v1403_v1 = vmul.f32 %v580_v62, %v530_v60  ;;  %465 = vrot.lane.b32.xlu1 %v389_v61, %s1204_s1  ;;  %v593_v4 = vcombine.high %v530_v60, %v530_v60  ;;  %v653_v10 = vsel %vm490_vm7, %v651_v7, %v648_v5  ;;  %v654_v23 = vsel %vm61_vm0, %v651_v7, %v652_v20 }
  0xe4   :  { %283 = vrot.lane.b32.xlu0 %v1379_v49, %s1197_s27  ;;  %v1424_v6 = vpop.permute.xlu1 %438  ;;  %v658_v13 = vmul.f32 %v653_v10, %v1357_v31  ;;  %v655_v24 = vsel %vm490_vm7, %v654_v23, %v1381_v50 }
  0xe5   :  { %v659_v34 = vmul.f32 %v655_v24, %v1370_v45 }
  0xe6   :  { %v1436_v0 = vcombine.high %v658_v13, %v658_v13  ;;  %v1473_v46 = vpop.permute.xlu0 %612 }
  0xe7   :  { %486 = vrot.lane.b32.xlu1 %v389_v61, %s1183_s23  ;;  %v711_v57 = vcombine.high %v659_v34, %v659_v34 }
  0xe8   :  { %304 = vrot.lane.b32.xlu0 %v1379_v49, %s1196_s26  ;;  %v1431_v14 = vpop.permute.xlu1 %786  ;;  %v844_v49 = vld [vmem:[#allocation6] sm:$0xf] }
  0xe9   :  { %v790_v42 = vrot.slane %v1431_v14, 4 }
  0xeb   :  { %565 = vrot.lane.b32.xlu1 %v530_v60, %s1198_s28  ;;  %v792_v44 = vsel %vm349_vm8, %v790_v42, %v1431_v14 }
  0xec   :  { %403 = vrot.lane.b32.xlu0 %v389_v61, %s1199_s29  ;;  %v1439_v17 = vpop.permute.xlu1 %459  ;;  %v797_v50 = vmul.f32 %v792_v44, %v1357_v31  ;;  %v866_v31 = vld [vmem:[#allocation6] sm:$0xf] }
  0xee   :  { %v1481_v53 = vcombine.high %v797_v50, %v797_v50 }
  0xef   :  { %281 = vrot.lane.b32.xlu1 %v257_v2, %s1197_s27 }
  0xf0   :  { %424 = vrot.lane.b32.xlu0 %v389_v61, %s1200_s30 }
  0xf1   :  { %v1445_v22 = vpop.permute.xlu1 %481 }
  0xf3   :  { %302 = vrot.lane.b32.xlu1 %v257_v2, %s1196_s26 }
  0xf4   :  { %445 = vrot.lane.b32.xlu0 %v389_v61, %s1202_s5  ;;  %v791_v61 = vrot.slane %v1391_v55, 4 }
  0xf6   :  { %v1454_v33 = vpop.permute.xlu1 %534 }
  0xf7   :  { %401 = vrot.lane.b32.xlu1 %v398_v3, %s1199_s29 }
  0xf8   :  { %544 = vrot.lane.b32.xlu0 %v530_v60, %s1203_s6 }
  0xfb   :  { %422 = vrot.lane.b32.xlu1 %v398_v3, %s1200_s30  ;;  %v1458_v35 = vpop.permute.xlu1 %558 }
  0xfc   :  { %596 = vrot.lane.b32.xlu0 %v530_v60, %s1205_s7 }
  0xff   :  { %443 = vrot.lane.b32.xlu1 %v398_v3, %s1202_s5 }
 0x100   :  { %260 = vrot.lane.b32.xlu0 %v257_v2, %s1195_s25  ;;  %v1462_v40 = vpop.permute.xlu1 %590 }
 0x103   :  { %542 = vrot.lane.b32.xlu1 %v539_v11, %s1203_s6 }
 0x104   :  { %322 = vrot.lane.b32.xlu0 %v257_v2, %s1201_s4 }
 0x105   :  { %v1467_v43 = vpop.permute.xlu1 %663 }
 0x107   :  { %594 = vrot.lane.b32.xlu1 %v539_v11, %s1205_s7 }
 0x108   :  { %343 = vrot.lane.b32.xlu0 %v257_v2, %s1185_s24  ;;  %v793_v2 = vsel %vm61_vm0, %v790_v42, %v791_v61  ;;  %vm600_vm0 = vcmask 916480  }
 0x109   :  { %v794_v5 = vsel %vm349_vm8, %v793_v2, %v1391_v55 }
 0x10a   :  { %v798_v10 = vmul.f32 %v794_v5, %v1370_v45 }
 0x10b   :  { %598 = vrot.lane.b32.xlu1 %v593_v4, %s1205_s7 }
 0x10c   :  { %463 = vrot.lane.b32.xlu0 %v398_v3, %s1204_s1  ;;  %v850_v45 = vcombine.high %v798_v10, %v798_v10 }
 0x10f   :  { %615 = vrot.lane.b32.xlu1 %v539_v11, %s1181_s22 }
 0x110   :  { %484 = vrot.lane.b32.xlu0 %v398_v3, %s1183_s23  ;;  %v887_v3 = vld [vmem:[#allocation6] sm:$0xf] }
 0x113   :  { %617 = vrot.lane.b32.xlu1 %v530_v60, %s1181_s22 }
 0x114   :  { %563 = vrot.lane.b32.xlu0 %v539_v11, %s1198_s28  ;;  %v1217_v11 = vmov 19  }
 0x117   :  { %708 = vperm.xlu1 %1052, %v705_v15  }
 0x118   :  { %326 = vrot.lane.b32.xlu0 %v321_v16, %s1201_s4 }
 0x11b   :  { %671 = vrot.lane.b32.xlu1 %v1436_v0, %s1206_s8 }
 0x11c   :  { %347 = vrot.lane.b32.xlu0 %v321_v16, %s1185_s24  ;;  %1053 = vset.pattern.permute.xlu1 %v1207_v18 }
 0x11f   :  { %730 = vperm.xlu1 %1053, %v727_v19  }
 0x120   :  { %467 = vrot.lane.b32.xlu0 %v462_v21, %s1204_s1 }
 0x123   :  { %692 = vrot.lane.b32.xlu1 %v1436_v0, %s1208_s9 }
 0x124   :  { %488 = vrot.lane.b32.xlu0 %v462_v21, %s1183_s23  ;;  %1054 = vset.pattern.permute.xlu1 %v1209_v26 }
 0x127   :  { %751 = vperm.xlu1 %1054, %v748_v30  }
 0x128   :  { %687 = vperm.xlu0 %1051, %v684_v32  }
 0x12b   :  { %714 = vrot.lane.b32.xlu1 %v659_v34, %s1210_s10 }
 0x12c   :  { %619 = vrot.lane.b32.xlu0 %v593_v4, %s1181_s22  ;;  %1055 = vset.pattern.permute.xlu1 %v1211_v37 }
 0x12d   :  { %1060 = vset.pattern.permute.xlu0 %v1212_v39 }
 0x12f   :  { %802 = vperm.xlu1 %1055, %v799_v38  }
 0x130   :  { %669 = vrot.lane.b32.xlu0 %v658_v13, %s1206_s8 }
 0x133   :  { %735 = vrot.lane.b32.xlu1 %v659_v34, %s1213_s11 }
 0x134   :  { %673 = vrot.lane.b32.xlu0 %v659_v34, %s1206_s8  ;;  %1056 = vset.pattern.permute.xlu1 %v1214_v41 }
 0x137   :  { %826 = vperm.xlu1 %1056, %v823_v12  }
 0x138   :  { %690 = vrot.lane.b32.xlu0 %v658_v13, %s1208_s9 }
 0x13b   :  { %756 = vrot.lane.b32.xlu1 %v659_v34, %s1179_s21 }
 0x13c   :  { %694 = vrot.lane.b32.xlu0 %v659_v34, %s1208_s9  ;;  %1057 = vset.pattern.permute.xlu1 %v1215_v47 }
 0x13d   :  { %v1477_v51 = vpop.permute.xlu1 %258  ;;  %v301_v56 = vpop.permute.xlu0 %300 }
 0x13f   :  { %847 = vperm.xlu1 %1057, %v844_v49  }
 0x140   :  { %712 = vrot.lane.b32.xlu0 %v1436_v0, %s1210_s10 }
 0x141   :  { %v280_v54 = vpop.permute.xlu1 %279 }
 0x143   :  { %810 = vrot.lane.b32.xlu1 %v1481_v53, %s1216_s12 }
 0x144   :  { %716 = vrot.lane.b32.xlu0 %v711_v57, %s1210_s10  ;;  %1058 = vset.pattern.permute.xlu1 %v1217_v11 }
 0x145   :  { %v1486_v58 = vpop.permute.xlu1 %561 }
 0x146   :  { %v400_v59 = vpop.permute.xlu0 %399 }
 0x147   :  { %869 = vperm.xlu1 %1058, %v866_v31  }
 0x148   :  { %733 = vrot.lane.b32.xlu0 %v1436_v0, %s1213_s11 }
 0x149   :  { %v263_v60 = vpop.permute.xlu1 %262 }
 0x14a   :  { %v421_v62 = vpop.permute.xlu0 %420 }
 0x14b   :  { %831 = vrot.lane.b32.xlu1 %v1481_v53, %s1218_s13 }
 0x14c   :  { %737 = vrot.lane.b32.xlu0 %v711_v57, %s1213_s11  ;;  %1059 = vset.pattern.permute.xlu1 %v1212_v39 }
 0x14d   :  { %v1495_v4 = vpop.permute.xlu1 %324 }
 0x14e   :  { %v1499_v7 = vpop.permute.xlu0 %441 }
 0x14f   :  { %890 = vperm.xlu1 %1059, %v887_v3  }
 0x150   :  { %754 = vrot.lane.b32.xlu0 %v1436_v0, %s1179_s21 }
 0x151   :  { %v1504_v13 = vpop.permute.xlu1 %345 }
 0x152   :  { %v541_v14 = vpop.permute.xlu0 %540 }
 0x153   :  { %853 = vrot.lane.b32.xlu1 %v798_v10, %s1219_s14 }
 0x154   :  { %758 = vrot.lane.b32.xlu0 %v711_v57, %s1179_s21 }
 0x155   :  { %v1508_v15 = vpop.permute.xlu1 %465 }
 0x156   :  { %v284_v16 = vpop.permute.xlu0 %283 }
 0x157   :  { %872 = vrot.lane.b32.xlu1 %v1481_v53, %s1220_s16 }
 0x158   :  { %808 = vrot.lane.b32.xlu0 %v797_v50, %s1216_s12 }
 0x159   :  { %v1513_v55 = vpop.permute.xlu1 %486 }
 0x15a   :  { %v305_v0 = vpop.permute.xlu0 %304 }
 0x15b   :  { %876 = vrot.lane.b32.xlu1 %v850_v45, %s1220_s16 }
 0x15c   :  { %812 = vrot.lane.b32.xlu0 %v798_v10, %s1216_s12 }
 0x15d   :  { %v1517_v18 = vpop.permute.xlu1 %565 }
 0x15e   :  { %v404_v19 = vpop.permute.xlu0 %403 }
 0x15f   :  { %895 = vrot.lane.b32.xlu1 %v798_v10, %s1173_s2 }
 0x160   :  { %829 = vrot.lane.b32.xlu0 %v797_v50, %s1218_s13 }
 0x161   :  { %v282_v20 = vpop.permute.xlu1 %281 }
 0x162   :  { %v286_v21 = vsel %vm285_vm9, %v280_v54, %v282_v20  ;;  %v287_v23 = vsel %vm285_vm9, %v282_v20, %v284_v16  ;;  %v425_v24 = vpop.permute.xlu0 %424  ;;  %vm739_vm9 = vcmask 908288  }
 0x163   :  { %v290_v57 = vmul.f32 %v286_v21, %v1353_v28  ;;  %v291_v11 = vmul.f32 %v287_v23, %v1353_v28 }
 0x164   :  { %833 = vrot.lane.b32.xlu0 %v798_v10, %s1218_s13 }
 0x165   :  { %v303_v26 = vpop.permute.xlu1 %302 }
 0x166   :  { %v307_v30 = vsel %vm306_vm10, %v301_v56, %v303_v26  ;;  %v308_v32 = vsel %vm306_vm10, %v303_v26, %v305_v0  ;;  %v1522_v34 = vpop.permute.xlu0 %445  ;;  %vm814_vm10 = vcmask 244736  }
 0x167   :  { %v311_v61 = vmul.f32 %v307_v30, %v1351_v27 }
 0x168   :  { %851 = vrot.lane.b32.xlu0 %v1481_v53, %s1219_s14 }
 0x169   :  { %v402_v37 = vpop.permute.xlu1 %401 }
 0x16a   :  { %v406_v38 = vsel %vm405_vm11, %v400_v59, %v402_v37  ;;  %v1526_v39 = vsel %vm405_vm11, %v402_v37, %v404_v19  ;;  %v545_v41 = vpop.permute.xlu0 %544  ;;  %vm835_vm11 = vcmask 113664  }
 0x16b   :  { %v410_v23 = vmul.f32 %v406_v38, %v1374_v48 }
 0x16c   :  { %855 = vrot.lane.b32.xlu0 %v850_v45, %s1219_s14 }
 0x16d   :  { %v423_v12 = vpop.permute.xlu1 %422 }
 0x16e   :  { %v427_v42 = vsel %vm426_vm12, %v421_v62, %v423_v12  ;;  %v1529_v44 = vsel %vm426_vm12, %v423_v12, %v425_v24  ;;  %v1531_v47 = vpop.permute.xlu0 %596  ;;  %v312_v62 = vmul.f32 %v308_v32, %v1351_v27  ;;  %vm857_vm12 = vcmask 1031168  }
 0x16f   :  { %v431_v32 = vmul.f32 %v427_v42, %v1385_v52 }
 0x170   :  { %874 = vrot.lane.b32.xlu0 %v798_v10, %s1220_s16 }
 0x171   :  { %v1534_v49 = vpop.permute.xlu1 %443 }
 0x172   :  { %v261_v50 = vpop.permute.xlu0 %260 }
 0x173   :  { %v265_v54 = vsel %vm264_vm13, %v1477_v51, %v261_v50  ;;  %v266_v56 = vsel %vm264_vm13, %v261_v50, %v263_v60  ;;  %vm878_vm13 = vcmask 900096  }
 0x174   :  { %v269_v31 = vmul.f32 %v265_v54, %v1349_v25  ;;  %v270_v59 = vmul.f32 %v266_v56, %v1349_v25  ;;  %893 = vrot.lane.b32.xlu0 %v1481_v53, %s1173_s2 }
 0x175   :  { %v543_v2 = vpop.permute.xlu1 %542 }
 0x176   :  { %v292_v51 = vadd.f32 %v290_v57, %v269_v31  ;;  %v293_v60 = vadd.f32 %v291_v11, %v270_v59  ;;  %v547_v3 = vsel %vm546_vm14, %v541_v14, %v543_v2  ;;  %v1545_v5 = vsel %vm546_vm14, %v543_v2, %v545_v41  ;;  %v323_v10 = vpop.permute.xlu0 %322 }
 0x177   :  { %v329_v28 = vsel %vm328_vm15, %v323_v10, %v1495_v4 }
 0x178   :  { %v313_v16 = vadd.f32 %v311_v61, %v292_v51  ;;  %v333_v25 = vmul.f32 %v329_v28, %v1355_v29  ;;  %897 = vrot.lane.b32.xlu0 %v850_v45, %s1173_s2  ;;  %v314_v53 = vadd.f32 %v312_v62, %v293_v60  ;;  %v448_v45 = vsel %vm447_vm1, %v1499_v7, %v1534_v49 }
 0x179   :  { %v595_v0 = vpop.permute.xlu1 %594  ;;  %v452_v41 = vmul.f32 %v448_v45, %v1424_v6  ;;  %v551_v61 = vmul.f32 %v547_v3, %v1454_v33 }
 0x17a   :  { %v335_v19 = vadd.f32 %v333_v25, %v313_v16  ;;  %v601_v27 = vsel %vm600_vm0, %v595_v0, %v1531_v47  ;;  %v344_v20 = vpop.permute.xlu0 %343 }
 0x17b   :  { %v350_v14 = vsel %vm349_vm8, %v344_v20, %v1504_v13  ;;  %v605_v0 = vmul.f32 %v601_v27, %v1462_v40 }
 0x17c   :  { %v354_v21 = vmul.f32 %v350_v14, %v1361_v36 }
 0x17d   :  { %v599_v57 = vpop.permute.xlu1 %598 }
 0x17e   :  { %v356_v24 = vadd.f32 %v354_v21, %v335_v19  ;;  %v464_v26 = vpop.permute.xlu0 %463  ;;  %v411_v21 = vmul.f32 %v1526_v39, %v1374_v48 }
 0x17f   :  { %v470_v30 = vsel %vm469_vm2, %v464_v26, %v1508_v15 }
 0x180   :  { %v412_v37 = vadd.f32 %v410_v23, %v356_v24  ;;  %v474_v56 = vmul.f32 %v470_v30, %v1439_v17 }
 0x181   :  { %v616_v28 = vpop.permute.xlu1 %615 }
 0x182   :  { %v433_v12 = vadd.f32 %v431_v32, %v412_v37  ;;  %v485_v50 = vpop.permute.xlu0 %484 }
 0x183   :  { %v491_v54 = vsel %vm490_vm7, %v485_v50, %v1513_v55 }
 0x184   :  { %v454_v38 = vadd.f32 %v452_v41, %v433_v12  ;;  %v495_v7 = vmul.f32 %v491_v54, %v1445_v22  ;;  %v602_v41 = vsel %vm600_vm0, %v1531_v47, %v599_v57 }
 0x185   :  { %v606_v12 = vmul.f32 %v602_v41, %v1462_v40 }
 0x186   :  { %v476_v11 = vadd.f32 %v474_v56, %v454_v38  ;;  %v564_v31 = vpop.permute.xlu0 %563 }
 0x187   :  { %v568_v59 = vsel %vm567_vm3, %v1486_v58, %v564_v31  ;;  %v569_v42 = vsel %vm567_vm3, %v564_v31, %v1517_v18 }
 0x188   :  { %v497_v62 = vadd.f32 %v495_v7, %v476_v11  ;;  %v572_v51 = vmul.f32 %v568_v59, %v1458_v35 }
 0x18a   :  { %v553_v2 = vadd.f32 %v551_v61, %v497_v62  ;;  %v327_v60 = vpop.permute.xlu0 %326 }
 0x18b   :  { %v330_v10 = vsel %vm328_vm15, %v1495_v4, %v327_v60  ;;  %v618_v4 = vpop.permute.xlu1 %617 }
 0x18c   :  { %v574_v16 = vadd.f32 %v572_v51, %v553_v2  ;;  %v334_v25 = vmul.f32 %v330_v10, %v1355_v29  ;;  %v449_v29 = vsel %vm447_vm1, %v1534_v49, %v1522_v34  ;;  %v621_v11 = vsel %vm523_vm5, %v616_v28, %v618_v4 }
 0x18d   :  { %v625_v31 = vmul.f32 %v621_v11, %v1473_v46 }
 0x18e   :  { %v585_v58 = vadd.f32 %v1401_v63, %v574_v16  ;;  %v336_v19 = vadd.f32 %v334_v25, %v314_v53  ;;  %v348_v18 = vpop.permute.xlu0 %347  ;;  %v432_v63 = vmul.f32 %v1529_v44, %v1385_v52  ;;  %v552_v44 = vmul.f32 %v1545_v5, %v1454_v33 }
 0x18f   :  { %v351_v3 = vsel %vm349_vm8, %v1504_v13, %v348_v18  ;;  %vm696_vm8 = vcmask 121856  }
 0x190   :  { %v355_v20 = vmul.f32 %v351_v3, %v1361_v36  ;;  %v607_v14 = vadd.f32 %v605_v0, %v585_v58  ;;  %v453_v36 = vmul.f32 %v449_v29, %v1424_v6  ;;  %v573_v6 = vmul.f32 %v569_v42, %v1458_v35 }
 0x192   :  { %v357_v23 = vadd.f32 %v355_v20, %v336_v19  ;;  %v468_v24 = vpop.permute.xlu0 %467  ;;  %v627_v61 = vadd.f32 %v625_v31, %v607_v14 }
 0x193   :  { %v471_v13 = vsel %vm469_vm2, %v1508_v15, %v468_v24 }
 0x194   :  { %v413_v53 = vadd.f32 %v411_v21, %v357_v23  ;;  %v475_v30 = vmul.f32 %v471_v13, %v1439_v17 }
 0x196   :  { %v434_v27 = vadd.f32 %v432_v63, %v413_v53  ;;  %v1590_v26 = vpop.permute.xlu1 %708  ;;  %v489_v48 = vpop.permute.xlu0 %488 }
 0x197   :  { %v492_v39 = vsel %vm490_vm7, %v1513_v55, %v489_v48  ;;  %vm675_vm7 = vcmask 252928  }
 0x198   :  { %v455_v45 = vadd.f32 %v453_v36, %v434_v27  ;;  %v496_v49 = vmul.f32 %v492_v39, %v1445_v22 }
 0x19a   :  { %v477_v34 = vadd.f32 %v475_v30, %v455_v45  ;;  %v672_v52 = vpop.permute.xlu1 %671 }
 0x19c   :  { %v498_v15 = vadd.f32 %v496_v49, %v477_v34 }
 0x19e   :  { %v554_v32 = vadd.f32 %v552_v44, %v498_v15  ;;  %v1599_v37 = vpop.permute.xlu1 %730 }
 0x1a0   :  { %v575_v55 = vadd.f32 %v573_v6, %v554_v32 }
 0x1a2   :  { %v693_v17 = vpop.permute.xlu1 %692  ;;  %v586_v50 = vadd.f32 %v1403_v1, %v575_v55 }
 0x1a4   :  { %v608_v22 = vadd.f32 %v606_v12, %v586_v50 }
 0x1a6   :  { %v1605_v54 = vpop.permute.xlu1 %751 }
 0x1a7   :  { %v688_v38 = vpop.permute.xlu0 %687 }
 0x1aa   :  { %v715_v33 = vpop.permute.xlu1 %714 }
 0x1ab   :  { %v620_v5 = vpop.permute.xlu0 %619 }
 0x1ac   :  { %v622_v40 = vsel %vm523_vm5, %v618_v4, %v620_v5  ;;  %vm718_vm5 = vcmask 1039360  }
 0x1ad   :  { %v626_v42 = vmul.f32 %v622_v40, %v1473_v46 }
 0x1ae   :  { %v1607_v56 = vpop.permute.xlu1 %802 }
 0x1af   :  { %v670_v35 = vpop.permute.xlu0 %669  ;;  %v628_v16 = vadd.f32 %v626_v42, %v608_v22 }
 0x1b0   :  { %v676_v7 = vsel %vm675_vm7, %v670_v35, %v672_v52 }
 0x1b1   :  { %v680_v1 = vmul.f32 %v676_v7, %v1467_v43 }
 0x1b2   :  { %v736_v47 = vpop.permute.xlu1 %735 }
 0x1b3   :  { %v674_v57 = vpop.permute.xlu0 %673  ;;  %v682_v60 = vadd.f32 %v680_v1, %v627_v61 }
 0x1b4   :  { %v677_v59 = vsel %vm675_vm7, %v672_v52, %v674_v57 }
 0x1b5   :  { %v681_v10 = vmul.f32 %v677_v59, %v1467_v43 }
 0x1b6   :  { %v1614_v62 = vpop.permute.xlu1 %826 }
 0x1b7   :  { %v691_v2 = vpop.permute.xlu0 %690  ;;  %v683_v19 = vadd.f32 %v681_v10, %v628_v16 }
 0x1b8   :  { %v697_v51 = vsel %vm696_vm8, %v691_v2, %v693_v17 }
 0x1b9   :  { %v701_v28 = vmul.f32 %v697_v51, %v688_v38 }
 0x1ba   :  { %v757_v18 = vpop.permute.xlu1 %756 }
 0x1bb   :  { %v703_v25 = vadd.f32 %v701_v28, %v682_v60  ;;  %v695_v0 = vpop.permute.xlu0 %694 }
 0x1bc   :  { %v698_v58 = vsel %vm696_vm8, %v693_v17, %v695_v0 }
 0x1bd   :  { %v702_v3 = vmul.f32 %v698_v58, %v688_v38 }
 0x1be   :  { %v1617_v4 = vpop.permute.xlu1 %847 }
 0x1bf   :  { %v704_v20 = vadd.f32 %v702_v3, %v683_v19  ;;  %v713_v21 = vpop.permute.xlu0 %712 }
 0x1c0   :  { %v719_v45 = vsel %vm718_vm5, %v713_v21, %v715_v33 }
 0x1c1   :  { %v723_v49 = vmul.f32 %v719_v45, %v1590_v26 }
 0x1c2   :  { %v811_v23 = vpop.permute.xlu1 %810 }
 0x1c3   :  { %v717_v46 = vpop.permute.xlu0 %716  ;;  %v725_v12 = vadd.f32 %v723_v49, %v703_v25 }
 0x1c4   :  { %v720_v52 = vsel %vm718_vm5, %v715_v33, %v717_v46 }
 0x1c5   :  { %v724_v17 = vmul.f32 %v720_v52, %v1590_v26 }
 0x1c6   :  { %v870_v29 = vpop.permute.xlu1 %869 }
 0x1c7   :  { %v734_v14 = vpop.permute.xlu0 %733  ;;  %v726_v57 = vadd.f32 %v724_v17, %v704_v20  ;;  %v942_v17 = vld [vmem:[#allocation8 + $0x8] sm:$0xff] }
 0x1c8   :  { %v740_v34 = vsel %vm739_vm9, %v734_v14, %v736_v47 }
 0x1c9   :  { %v744_v15 = vmul.f32 %v740_v34, %v1599_v37 }
 0x1ca   :  { %v832_v43 = vpop.permute.xlu1 %831 }
 0x1cb   :  { %v738_v24 = vpop.permute.xlu0 %737  ;;  %v746_v33 = vadd.f32 %v744_v15, %v725_v12  ;;  %v927_v12 = vld [vmem:[#allocation8] sm:$0xff] }
 0x1cc   :  { %v741_v41 = vsel %vm739_vm9, %v736_v47, %v738_v24 }
 0x1cd   :  { %v745_v5 = vmul.f32 %v741_v41, %v1599_v37 }
 0x1ce   :  { %v1619_v36 = vpop.permute.xlu1 %890 }
 0x1cf   :  { %v755_v63 = vpop.permute.xlu0 %754  ;;  %v747_v42 = vadd.f32 %v745_v5, %v726_v57 }
 0x1d0   :  { %v760_v44 = vsel %vm382_vm6, %v755_v63, %v757_v18 }
 0x1d1   :  { %v764_v50 = vmul.f32 %v760_v44, %v1605_v54 }
 0x1d2   :  { %v854_v39 = vpop.permute.xlu1 %853 }
 0x1d3   :  { %v759_v53 = vpop.permute.xlu0 %758  ;;  %v766_v26 = vadd.f32 %v764_v50, %v746_v33 }
 0x1d4   :  { %v761_v22 = vsel %vm382_vm6, %v757_v18, %v759_v53 }
 0x1d5   :  { %v765_v40 = vmul.f32 %v761_v22, %v1605_v54 }
 0x1d6   :  { %v873_v6 = vpop.permute.xlu1 %872 }
 0x1d7   :  { %v809_v13 = vpop.permute.xlu0 %808  ;;  %v767_v28 = vadd.f32 %v765_v40, %v747_v42 }
 0x1d8   :  { %v815_v55 = vsel %vm814_vm10, %v809_v13, %v811_v23 }
 0x1d9   :  { %v819_v35 = vmul.f32 %v815_v55, %v1607_v56 }
 0x1da   :  { %v877_v31 = vpop.permute.xlu1 %876 }
 0x1db   :  { %v813_v27 = vpop.permute.xlu0 %812  ;;  %v821_v61 = vadd.f32 %v819_v35, %v766_v26 }
 0x1dc   :  { %v816_v7 = vsel %vm814_vm10, %v811_v23, %v813_v27 }
 0x1dd   :  { %v820_v37 = vmul.f32 %v816_v7, %v1607_v56 }
 0x1de   :  { %v896_v19 = vpop.permute.xlu1 %895 }
 0x1df   :  { %v830_v48 = vpop.permute.xlu0 %829  ;;  %v822_v58 = vadd.f32 %v820_v37, %v767_v28 }
 0x1e0   :  { %v836_v38 = vsel %vm835_vm11, %v830_v48, %v832_v43 }
 0x1e1   :  { %v840_v1 = vmul.f32 %v836_v38, %v1614_v62 }
 0x1e3   :  { %v834_v30 = vpop.permute.xlu0 %833  ;;  %v842_v16 = vadd.f32 %v840_v1, %v821_v61 }
 0x1e4   :  { %v837_v59 = vsel %vm835_vm11, %v832_v43, %v834_v30 }
 0x1e5   :  { %v841_v54 = vmul.f32 %v837_v59, %v1614_v62 }
 0x1e7   :  { %v852_v32 = vpop.permute.xlu0 %851  ;;  %v843_v21 = vadd.f32 %v841_v54, %v822_v58 }
 0x1e8   :  { %v858_v47 = vsel %vm857_vm12, %v852_v32, %v854_v39 }
 0x1e9   :  { %v862_v2 = vmul.f32 %v858_v47, %v1617_v4 }
 0x1eb   :  { %v856_v11 = vpop.permute.xlu0 %855  ;;  %v864_v18 = vadd.f32 %v862_v2, %v842_v16 }
 0x1ec   :  { %v859_v60 = vsel %vm857_vm12, %v854_v39, %v856_v11 }
 0x1ed   :  { %v863_v3 = vmul.f32 %v859_v60, %v1617_v4 }
 0x1ef   :  { %v875_v51 = vpop.permute.xlu0 %874  ;;  %v865_v24 = vadd.f32 %v863_v3, %v843_v21 }
 0x1f0   :  { %v879_v10 = vsel %vm878_vm13, %v873_v6, %v875_v51  ;;  %v880_v0 = vsel %vm878_vm13, %v875_v51, %v877_v31 }
 0x1f1   :  { %v883_v25 = vmul.f32 %v879_v10, %v870_v29  ;;  %v884_v46 = vmul.f32 %v880_v0, %v870_v29 }
 0x1f3   :  { %v894_v56 = vpop.permute.xlu0 %893  ;;  %v885_v14 = vadd.f32 %v883_v25, %v864_v18  ;;  %v886_v43 = vadd.f32 %v884_v46, %v865_v24 }
 0x1f4   :  { %v899_v20 = vsel %vm241_vm4, %v894_v56, %v896_v19 }
 0x1f5   :  { %v903_v23 = vmul.f32 %v899_v20, %v1619_v36 }
 0x1f7   :  { %v905_v63 = vadd.f32 %v903_v23, %v885_v14  ;;  %v898_v53 = vpop.permute.xlu0 %897 }
 0x1f8   :  { %v900_v62 = vsel %vm241_vm4, %v896_v19, %v898_v53 }
 0x1f9   :  { %v909_v13 = vrot.slane %v905_v63, 2  ;;  %v904_v27 = vmul.f32 %v900_v62, %v1619_v36 }
 0x1fb   :  { %v913_v48 = vadd.f32 %v909_v13, %v905_v63  ;;  %v906_v39 = vadd.f32 %v904_v27, %v886_v43 }
 0x1fd   :  { %v976_v4 = vmul.f32 -1.442695, %v913_v48  ;;  %v910_v45 = vrot.slane %v906_v39, 2 }
 0x1ff   :  { %1063 = vpow2.f32 %v976_v4  ;;  %v914_v30 = vadd.f32 %v910_v45, %v906_v39 }
 0x201   :  { %v977_v34 = vmul.f32 -1.442695, %v914_v30 }
 0x203   :  { %1065 = vpow2.f32 %v977_v34 }
 0x209   :  { %v1064_v29 = vpop.eup %1063 }
 0x20a   :  { %v921_v49 = vadd.f32 1.0, %v1064_v29 }
 0x20c   :  { %1067 = vrcp.f32 %v921_v49 }
 0x20d   :  { %v1066_v52 = vpop.eup %1065 }
 0x20e   :  { %v922_v44 = vadd.f32 1.0, %v1066_v52 }
 0x210   :  { %1069 = vrcp.f32 %v922_v44 }
 0x216   :  { %v1068_v15 = vpop.eup %1067 }
 0x217   :  { %v931_v32 = vrot.slane %v1068_v15, %v1284_v8  ;;  %v946_v41 = vrot.slane %v1068_v15, %v1286_v9 }
 0x21a   :  { %v1070_v6 = vpop.eup %1069 }
 0x21b   :  { %v935_v36 = vrot.slane %v1070_v6, %v1284_v8  ;;  %v950_v55 = vrot.slane %v1070_v6, %v1286_v9 }
 0x21d   :  { %v938_v50 = vcombine.low %v931_v32, %v935_v36  ;;  %v953_v22 = vcombine.low %v946_v41, %v950_v55 }
 0x21f   :  { %v940_v38 = vmul.f32 %v938_v50, %v927_v12  ;;  %v955_v33 = vmul.f32 %v953_v22, %v942_v17 }
 0x221   :  { %941 = vst [vmem:[#allocation9] sm:$0xff] %v940_v38  ;;  %957 = vst [vmem:[#allocation9 + $0x8] sm:$0xff] %v955_v33 }
 0x222   :  { %1148 = shalt.err (!%p1145_p0)
}
 0x223   :  { %s1149_s21 = scalar_lea.hbm %s1669_s3, 256 }
 0x224   :  { %p1150_p1 = scmp.ne.s32.totalorder %s1669_s3, %s1149_s21  ;;  %p1153_p2 = scmp.lt.u32.totalorder %s1149_s21, %s1669_s3 }
 0x226   :  { %p1155_p3 = pnand %p1153_p2, %p1150_p1 }
 0x228   :  { %1158 = shalt.err (!%p1155_p3)
}
 0x229   :  { %969 = dma.vmem_to_hbm [thread:$0]  %s964_s18, 256, %s1669_s3, [#allocation5], %s1168_s0, %s1168_s0, %s1169_s15  }
 0x22a   :  { %1163 = dma.done.wait [#allocation5], 256  }
 0x22b   :  { %1164 = vsyncadd [#allocation5], 4294967040 }
 0x22c   :  { %973 = vsyncpa [#allocation4], 1 }
 0x22d   :  { %974 = vsyncpa [#allocation7], 1 }
 0x22e   :  { %975 = vsyncpa [#allocation5], 1 }

</bundles_post_ra>
